<compile_context>
chip_gen: v7x
topology: tpu7x:2x2x1
jax: 0.10.0
libtpu: 0.0.40
codegen_flags: <defaults>
</compile_context>

<pallas_src>
import functools
import math

import jax
import jax.numpy as jnp
import numpy as np
from jax.experimental import pallas as pl
from jax.experimental.pallas import tpu as pltpu


# ----------------------------------------------------------------------------
# Fused kernel: qkv projection + window attention + out projection
# ----------------------------------------------------------------------------
def _fused_window_attention_kernel(x_ref, wqkv_ref, bqkv_ref, wout_ref,
                                   bout_ref, bias_ref, o_ref, *, ws, heads):
    # x_ref:    (1, ws, Wp, C)   bf16   one row of windows (NHWC slab)
    # wqkv_ref: (C, 3C)          bf16   resident (softmax scale folded in q cols)
    # bqkv_ref: (1, 3C)          f32    resident
    # wout_ref: (C, C)           bf16   resident
    # bout_ref: (1, C)           f32    resident
    # bias_ref: (heads, L, L)    bf16   resident relative-position bias
    # o_ref:    (1, ws, Wp, C)   output dtype
    Wp = x_ref.shape[2]
    C = x_ref.shape[3]
    wd = Wp // ws                      # windows in this block
    L = ws * ws
    hd = C // heads

    # ---- window grouping in VMEM: (ws, Wp, C) -> (wd*L, C) window-major ----
    x = x_ref[0]                                       # (ws, Wp, C)
    x = x.reshape(ws, wd, ws, C)
    x = jnp.transpose(x, (1, 0, 2, 3))                 # leading-dims swap only
    x = x.reshape(wd * L, C)

    # ---- fused to_qkv: single C-deep MXU matmul, f32 accumulation ----
    qkv = jnp.dot(x, wqkv_ref[...], preferred_element_type=jnp.float32)
    qkv = (qkv + bqkv_ref[...]).astype(jnp.bfloat16).reshape(wd, L, 3 * C)

    # ---- expose heads as a leading batch dim (batch order = (head, window)) ----
    def gather_heads(col0):            # -> (heads*wd, L, hd)
        return jnp.concatenate(
            [qkv[:, :, col0 + h * hd: col0 + (h + 1) * hd] for h in range(heads)],
            axis=0)

    q = gather_heads(0)
    k = gather_heads(C)
    v = gather_heads(2 * C)

    # ---- one batched attention einsum pair, batch = heads*wd ----
    s = jnp.einsum("bqd,bkd->bqk", q, k, preferred_element_type=jnp.float32)
    s = s.reshape(heads, wd, L, L) + bias_ref[...].astype(jnp.float32)[:, None]
    m = jnp.max(s, axis=-1, keepdims=True)
    p = jnp.exp(s - m)
    denom = jnp.sum(p, axis=-1, keepdims=True)         # >= 1 -> approx recip safe
    p = p.reshape(heads * wd, L, L).astype(jnp.bfloat16)
    o = jnp.einsum("bqk,bkd->bqd", p, v, preferred_element_type=jnp.float32)
    o = o * pl.reciprocal(denom.reshape(heads * wd, L, 1), approx=True)

    # ---- fused to_out: sum of per-head hd-deep partial matmuls (no lane concat) ----
    y = bout_ref[...]                                   # (1, C) f32, broadcasts
    for h in range(heads):
        o_h = o[h * wd:(h + 1) * wd].reshape(wd * L, hd).astype(jnp.bfloat16)
        y = y + jnp.dot(o_h, wout_ref[h * hd:(h + 1) * hd, :],
                        preferred_element_type=jnp.float32)   # (wd*L, C)

    # ---- window un-grouping and store back to the NHWC slab ----
    y = y.reshape(wd, ws, ws, C)
    y = jnp.transpose(y, (1, 0, 2, 3)).reshape(1, ws, Wp, C)
    o_ref[...] = y.astype(o_ref.dtype)


# ----------------------------------------------------------------------------
# Host-side helpers
# ----------------------------------------------------------------------------
def build_rpe_bias(rpb, window_size):
    """rpb: (heads, (2*ws-1)^2) -> dense (heads, L, L) additive bias.

    Same gather as WindowAttention.create_table_idxs; static per window_size.
    """
    ws = window_size
    L = ws * ws
    idx = np.arange(L)
    ch = idx // ws
    cw = idx % ws
    rel_h = ch[None, :] - ch[:, None] + ws - 1          # k_h - q_h + ws - 1
    rel_w = cw[None, :] - cw[:, None] + ws - 1
    rel_idx = rel_h * (2 * ws - 1) + rel_w              # (L, L)
    return jnp.asarray(rpb)[:, jnp.asarray(rel_idx)].astype(jnp.float32)


def window_attention_forward(x, w_qkv, b_qkv, w_out, b_out, bias,
                             window_size, num_heads):
    """Full WindowAttention.forward ('SDPA'/'Naive' semantics).

    x: (B, C, H, W).  w_qkv: (C, 3C), b_qkv: (3C,), w_out: (C, C), b_out: (C,)
    (1x1 conv weights as matrices).  bias: (heads, L, L) from build_rpe_bias.
    """
    B, C, h, w = x.shape
    ws = window_size
    hd = C // num_heads
    L = ws * ws
    in_dtype = x.dtype

    # Fold the 1/sqrt(hd) softmax scale into the q columns of to_qkv (host-side,
    # constant weights) -> no in-kernel elementwise scale, slightly better f32 math.
    scale = 1.0 / math.sqrt(hd)
    col_scale = jnp.concatenate([jnp.full((C,), scale, w_qkv.dtype),
                                 jnp.ones((2 * C,), w_qkv.dtype)])
    w_qkv_s = (w_qkv * col_scale[None, :]).astype(jnp.bfloat16)
    b_qkv_s = (b_qkv * col_scale).astype(jnp.float32).reshape(1, 3 * C)
    w_out_b = w_out.astype(jnp.bfloat16)
    b_out_f = b_out.astype(jnp.float32).reshape(1, C)
    bias_b = bias.astype(jnp.bfloat16)

    # NCHW -> NHWC once (the only layout pass); bf16 activations into the kernel.
    xh = jnp.transpose(x, (0, 2, 3, 1)).astype(jnp.bfloat16)
    pad_h = (ws - h % ws) % ws
    pad_w = (ws - w % ws) % ws
    xh = jnp.pad(xh, ((0, 0), (0, pad_h), (0, pad_w), (0, 0)), mode="reflect")
    Hp, Wp = xh.shape[1], xh.shape[2]
    h_div, w_div = Hp // ws, Wp // ws
    nW = B * h_div * w_div
    out_item = np.dtype(in_dtype).itemsize

    # VMEM budget (double-buffered in/out blocks + resident weights/bias + temps),
    # with headroom; capped well under v7x's 64 MiB physical VMEM.
    blk_in = ws * Wp * C * 2
    blk_out = ws * Wp * C * out_item
    resident = (C * 3 * C + C * C) * 2 + 4 * C * 4 + num_heads * L * L * 2
    temps = (w_div * L * 3 * C * 2 + 3 * w_div * num_heads * L * hd * 2
             + 2 * w_div * num_heads * L * L * 4
             + w_div * num_heads * L * hd * 4 + w_div * L * C * 4)
    need = 2 * (blk_in + blk_out) + 2 * resident + temps
    vmem_limit = int(min(max(4 * need, 32 << 20), 48 << 20))

    cost = pl.CostEstimate(
        flops=int(2 * B * Hp * Wp * C * 3 * C              # qkv projection
                  + 4 * nW * num_heads * L * L * hd        # QK^T + PV
                  + 2 * B * Hp * Wp * C * C),              # out projection
        transcendentals=int(nW * num_heads * L * L),
        bytes_accessed=int(B * Hp * Wp * C * (2 + out_item) + 2 * resident),
    )

    kernel = functools.partial(_fused_window_attention_kernel,
                               ws=ws, heads=num_heads)
    out = pl.pallas_call(
        kernel,
        out_shape=jax.ShapeDtypeStruct((B, Hp, Wp, C), in_dtype),
        grid=(B, h_div),
        in_specs=[
            pl.BlockSpec((1, ws, Wp, C), lambda b, i: (b, i, 0, 0)),   # x row of windows
            pl.BlockSpec((C, 3 * C), lambda b, i: (0, 0)),             # w_qkv resident
            pl.BlockSpec((1, 3 * C), lambda b, i: (0, 0)),             # b_qkv resident
            pl.BlockSpec((C, C), lambda b, i: (0, 0)),                 # w_out resident
            pl.BlockSpec((1, C), lambda b, i: (0, 0)),                 # b_out resident
            pl.BlockSpec((num_heads, L, L), lambda b, i: (0, 0, 0)),   # RPE bias resident
        ],
        out_specs=pl.BlockSpec((1, ws, Wp, C), lambda b, i: (b, i, 0, 0)),
        compiler_params=pltpu.CompilerParams(
            dimension_semantics=("parallel", "parallel"),
            vmem_limit_bytes=vmem_limit),
        cost_estimate=cost,
    )(xh, w_qkv_s, b_qkv_s, w_out_b, b_out_f, bias_b)

    out = out[:, :h, :w, :]                                 # crop the window padding
    return jnp.transpose(out, (0, 3, 1, 2))                 # NHWC -> NCHW


# ----------------------------------------------------------------------------
# Pure-JAX f32 reference (Pallas path uses bf16 matmul inputs, f32 accumulation)
# ----------------------------------------------------------------------------
def _reference(x, w_qkv, b_qkv, w_out, b_out, bias, ws, heads):
    B, C, h, w = x.shape
    hd = C // heads
    pad_h = (ws - h % ws) % ws
    pad_w = (ws - w % ws) % ws
    xp = jnp.pad(x, ((0, 0), (0, 0), (0, pad_h), (0, pad_w)), mode="reflect")
    Hp, Wp = xp.shape[2], xp.shape[3]
    hdv, wdv = Hp // ws, Wp // ws
    xt = jnp.transpose(xp, (0, 2, 3, 1))                          # (B, Hp, Wp, C)
    qkv = xt.reshape(-1, C) @ w_qkv + b_qkv                       # (B*Hp*Wp, 3C)
    qkv = qkv.reshape(B, hdv, ws, wdv, ws, 3, heads, hd)
    qkv = jnp.transpose(qkv, (5, 0, 1, 3, 6, 2, 4, 7))            # (3,B,hdv,wdv,heads,ws,ws,hd)
    qkv = qkv.reshape(3, B * hdv * wdv, heads, ws * ws, hd)
    q, k, v = qkv[0], qkv[1], qkv[2]
    s = jnp.einsum("nhqd,nhkd->nhqk", q, k) / math.sqrt(hd) + bias[None]
    p = jax.nn.softmax(s, axis=-1)
    o = jnp.einsum("nhqk,nhkd->nhqd", p, v)                       # (nW, heads, L, hd)
    o = o.reshape(B, hdv, wdv, heads, ws, ws, hd)
    o = jnp.transpose(o, (0, 1, 4, 2, 5, 3, 6)).reshape(B, Hp, Wp, C)
    o = o[:, :h, :w, :]
    out = o.reshape(-1, C) @ w_out + b_out
    return jnp.transpose(out.reshape(B, h, w, C), (0, 3, 1, 2))


# ----------------------------------------------------------------------------
if __name__ == "__main__":
    key = jax.random.PRNGKey(0)
    B, dim, H, W = 2, 16, 14, 14          # 14 not a multiple of ws -> exercises reflect pad/crop
    num_heads, window_size = 2, 8

    k1, k2, k3, k4, k5, k6 = jax.random.split(key, 6)
    x = jax.random.normal(k1, (B, dim, H, W), jnp.float32)
    # to_qkv: Conv2d(dim, 3*dim, 1) -> weight as (dim, 3*dim), bias (3*dim,)
    w_qkv = jax.random.normal(k2, (dim, 3 * dim), jnp.float32) * 0.05
    b_qkv = jax.random.normal(k3, (3 * dim,), jnp.float32) * 0.05
    # to_out: Conv2d(dim, dim, 1)
    w_out = jax.random.normal(k4, (dim, dim), jnp.float32) * 0.05
    b_out = jax.random.normal(k5, (dim,), jnp.float32) * 0.05
    # relative_position_bias: (heads, (2*ws-1)^2) * 0.001
    rpb = jax.random.normal(k6, (num_heads, (2 * window_size - 1) ** 2),
                            jnp.float32) * 0.001

    # RPE bias gather is static per window_size: precompute once, outside jit.
    bias = build_rpe_bias(rpb, window_size)

    fwd = jax.jit(functools.partial(window_attention_forward,
                                    window_size=window_size, num_heads=num_heads))
    out = jax.block_until_ready(fwd(x, w_qkv, b_qkv, w_out, b_out, bias))

    assert out.shape == (B, dim, H, W), out.shape
    ref = _reference(x, w_qkv, b_qkv, w_out, b_out, bias, window_size, num_heads)
    # loose tolerance: Pallas path uses bf16 matmul inputs (f32 accumulation)
    # and an approx reciprocal in the softmax normalization.
    np.testing.assert_allclose(np.asarray(out), np.asarray(ref), rtol=2e-2, atol=2e-2)

    print("KERNEL_OK")
</pallas_src>

<mosaic_0001>
module attributes {stable_mosaic.version = 11 : i64} {
  func.func @_fused_window_attention_kernel(%arg0: i32, %arg1: i32, %arg2: memref<1x8x16x16xbf16, #tpu.memory_space<vmem>>, %arg3: memref<16x48xbf16, #tpu.memory_space<vmem>>, %arg4: memref<1x48xf32, #tpu.memory_space<vmem>>, %arg5: memref<16x16xbf16, #tpu.memory_space<vmem>>, %arg6: memref<1x16xf32, #tpu.memory_space<vmem>>, %arg7: memref<2x64x64xbf16, #tpu.memory_space<vmem>>, %arg8: memref<1x8x16x16xf32, #tpu.memory_space<vmem>>) attributes {dimension_semantics = [#tpu.dimension_semantics<parallel>, #tpu.dimension_semantics<parallel>], iteration_bounds = array<i64: 2, 2>, scalar_prefetch = 0 : i64, scratch_operands = 0 : i64, tpu.core_type = #tpu.core_type<tc>, window_params = [{transform_indices = @transform_0, window_bounds = array<i64: 1, 8, 16, 16>}, {pipeline_mode = #tpu.pipeline_mode<synchronous>, transform_indices = @transform_1, window_bounds = array<i64: 16, 48>}, {pipeline_mode = #tpu.pipeline_mode<synchronous>, transform_indices = @transform_2, window_bounds = array<i64: 1, 48>}, {pipeline_mode = #tpu.pipeline_mode<synchronous>, transform_indices = @transform_3, window_bounds = array<i64: 16, 16>}, {pipeline_mode = #tpu.pipeline_mode<synchronous>, transform_indices = @transform_4, window_bounds = array<i64: 1, 16>}, {pipeline_mode = #tpu.pipeline_mode<synchronous>, transform_indices = @transform_5, window_bounds = array<i64: 2, 64, 64>}, {transform_indices = @transform_6, window_bounds = array<i64: 1, 8, 16, 16>}]} {
    %c0 = arith.constant 0 : index
    %c0_0 = arith.constant 0 : index
    %c0_1 = arith.constant 0 : index
    %c0_2 = arith.constant 0 : index
    %0 = vector.load %arg2[%c0, %c0_0, %c0_1, %c0_2] : memref<1x8x16x16xbf16, #tpu.memory_space<vmem>>, vector<1x8x16x16xbf16>
    %1 = vector.shape_cast %0 : vector<1x8x16x16xbf16> to vector<8x16x16xbf16>
    %2 = vector.shape_cast %1 : vector<8x16x16xbf16> to vector<8x2x8x16xbf16>
    %3 = tpu.transpose %2, [1, 0, 2, 3] : vector<8x2x8x16xbf16> -> vector<2x8x8x16xbf16>
    %4 = vector.shape_cast %3 : vector<2x8x8x16xbf16> to vector<128x16xbf16>
    %c0_3 = arith.constant 0 : index
    %c0_4 = arith.constant 0 : index
    %5 = vector.load %arg3[%c0_3, %c0_4] : memref<16x48xbf16, #tpu.memory_space<vmem>>, vector<16x48xbf16>
    %cst = arith.constant dense<0.000000e+00> : vector<128x48xf32>
    %6 = tpu.matmul %4, %5, %cst {dimension_numbers = #tpu.dot_dimension_numbers<[1], [0], [0], [1], [0, 0, 1, 1], [], []>} : vector<128x16xbf16>, vector<16x48xbf16>, vector<128x48xf32> -> vector<128x48xf32>
    %c0_5 = arith.constant 0 : index
    %c0_6 = arith.constant 0 : index
    %7 = vector.load %arg4[%c0_5, %c0_6] : memref<1x48xf32, #tpu.memory_space<vmem>>, vector<1x48xf32>
    %8 = vector.broadcast %7 : vector<1x48xf32> to vector<128x48xf32>
    %9 = arith.addf %6, %8 : vector<128x48xf32>
    %10 = arith.truncf %9 : vector<128x48xf32> to vector<128x48xbf16>
    %11 = vector.shape_cast %10 : vector<128x48xbf16> to vector<2x64x48xbf16>
    %12 = vector.extract_strided_slice %11 {offsets = [0, 0, 0], sizes = [2, 64, 8], strides = [1, 1, 1]} : vector<2x64x48xbf16> to vector<2x64x8xbf16>
    %13 = vector.extract_strided_slice %11 {offsets = [0, 0, 8], sizes = [2, 64, 8], strides = [1, 1, 1]} : vector<2x64x48xbf16> to vector<2x64x8xbf16>
    %14 = tpu.concatenate %12, %13 in 0 : vector<2x64x8xbf16>, vector<2x64x8xbf16> -> vector<4x64x8xbf16>
    %15 = vector.extract_strided_slice %11 {offsets = [0, 0, 16], sizes = [2, 64, 8], strides = [1, 1, 1]} : vector<2x64x48xbf16> to vector<2x64x8xbf16>
    %16 = vector.extract_strided_slice %11 {offsets = [0, 0, 24], sizes = [2, 64, 8], strides = [1, 1, 1]} : vector<2x64x48xbf16> to vector<2x64x8xbf16>
    %17 = tpu.concatenate %15, %16 in 0 : vector<2x64x8xbf16>, vector<2x64x8xbf16> -> vector<4x64x8xbf16>
    %18 = vector.extract_strided_slice %11 {offsets = [0, 0, 32], sizes = [2, 64, 8], strides = [1, 1, 1]} : vector<2x64x48xbf16> to vector<2x64x8xbf16>
    %19 = vector.extract_strided_slice %11 {offsets = [0, 0, 40], sizes = [2, 64, 8], strides = [1, 1, 1]} : vector<2x64x48xbf16> to vector<2x64x8xbf16>
    %20 = tpu.concatenate %18, %19 in 0 : vector<2x64x8xbf16>, vector<2x64x8xbf16> -> vector<4x64x8xbf16>
    "tpu.trace_start"() <{level = 10 : i32, message = "bqd,bkd->bqk"}> : () -> ()
    %cst_7 = arith.constant dense<0.000000e+00> : vector<4x64x64xf32>
    %21 = tpu.matmul %14, %17, %cst_7 {dimension_numbers = #tpu.dot_dimension_numbers<[2], [2], [1], [1], [0, 0, 0, 1, 1, 1], [0], [0]>} : vector<4x64x8xbf16>, vector<4x64x8xbf16>, vector<4x64x64xf32> -> vector<4x64x64xf32>
    "tpu.trace_stop"() : () -> ()
    %22 = vector.shape_cast %21 : vector<4x64x64xf32> to vector<2x2x64x64xf32>
    %c0_8 = arith.constant 0 : index
    %c0_9 = arith.constant 0 : index
    %c0_10 = arith.constant 0 : index
    %23 = vector.load %arg7[%c0_8, %c0_9, %c0_10] : memref<2x64x64xbf16, #tpu.memory_space<vmem>>, vector<2x64x64xbf16>
    %24 = arith.extf %23 : vector<2x64x64xbf16> to vector<2x64x64xf32>
    %25 = vector.shape_cast %24 : vector<2x64x64xf32> to vector<2x1x64x64xf32>
    %26 = vector.broadcast %25 : vector<2x1x64x64xf32> to vector<2x2x64x64xf32>
    %27 = arith.addf %22, %26 : vector<2x2x64x64xf32>
    %cst_11 = arith.constant dense<0xFF800000> : vector<2x2x64xf32>
    %28 = vector.multi_reduction <maximumf>, %27, %cst_11 [3] : vector<2x2x64x64xf32> to vector<2x2x64xf32>
    %29 = vector.shape_cast %28 : vector<2x2x64xf32> to vector<2x2x64x1xf32>
    %30 = vector.broadcast %29 : vector<2x2x64x1xf32> to vector<2x2x64x64xf32>
    %31 = arith.subf %27, %30 : vector<2x2x64x64xf32>
    %32 = math.exp %31 : vector<2x2x64x64xf32>
    %cst_12 = arith.constant dense<0.000000e+00> : vector<2x2x64xf32>
    %33 = vector.multi_reduction <add>, %32, %cst_12 [3] : vector<2x2x64x64xf32> to vector<2x2x64xf32>
    %34 = vector.shape_cast %33 : vector<2x2x64xf32> to vector<2x2x64x1xf32>
    %35 = vector.shape_cast %32 : vector<2x2x64x64xf32> to vector<4x64x64xf32>
    %36 = arith.truncf %35 : vector<4x64x64xf32> to vector<4x64x64xbf16>
    "tpu.trace_start"() <{level = 10 : i32, message = "bqk,bkd->bqd"}> : () -> ()
    %cst_13 = arith.constant dense<0.000000e+00> : vector<4x64x8xf32>
    %37 = tpu.matmul %36, %20, %cst_13 {dimension_numbers = #tpu.dot_dimension_numbers<[2], [1], [1], [2], [0, 0, 0, 1, 1, 2], [0], [0]>} : vector<4x64x64xbf16>, vector<4x64x8xbf16>, vector<4x64x8xf32> -> vector<4x64x8xf32>
    "tpu.trace_stop"() : () -> ()
    %38 = vector.shape_cast %34 : vector<2x2x64x1xf32> to vector<4x64x1xf32>
    %39 = tpu.reciprocal %38 {approx = true} : vector<4x64x1xf32> -> vector<4x64x1xf32>
    %40 = vector.broadcast %39 : vector<4x64x1xf32> to vector<4x64x8xf32>
    %41 = arith.mulf %37, %40 : vector<4x64x8xf32>
    %c0_14 = arith.constant 0 : index
    %c0_15 = arith.constant 0 : index
    %42 = vector.load %arg6[%c0_14, %c0_15] : memref<1x16xf32, #tpu.memory_space<vmem>>, vector<1x16xf32>
    %43 = vector.extract_strided_slice %41 {offsets = [0, 0, 0], sizes = [2, 64, 8], strides = [1, 1, 1]} : vector<4x64x8xf32> to vector<2x64x8xf32>
    %44 = vector.shape_cast %43 : vector<2x64x8xf32> to vector<128x8xf32>
    %45 = arith.truncf %44 : vector<128x8xf32> to vector<128x8xbf16>
    %c0_16 = arith.constant 0 : index
    %c0_17 = arith.constant 0 : index
    %46 = vector.load %arg5[%c0_16, %c0_17] : memref<16x16xbf16, #tpu.memory_space<vmem>>, vector<8x16xbf16>
    %cst_18 = arith.constant dense<0.000000e+00> : vector<128x16xf32>
    %47 = tpu.matmul %45, %46, %cst_18 {dimension_numbers = #tpu.dot_dimension_numbers<[1], [0], [0], [1], [0, 0, 1, 1], [], []>} : vector<128x8xbf16>, vector<8x16xbf16>, vector<128x16xf32> -> vector<128x16xf32>
    %48 = vector.broadcast %42 : vector<1x16xf32> to vector<128x16xf32>
    %49 = arith.addf %48, %47 : vector<128x16xf32>
    %50 = vector.extract_strided_slice %41 {offsets = [2, 0, 0], sizes = [2, 64, 8], strides = [1, 1, 1]} : vector<4x64x8xf32> to vector<2x64x8xf32>
    %51 = vector.shape_cast %50 : vector<2x64x8xf32> to vector<128x8xf32>
    %52 = arith.truncf %51 : vector<128x8xf32> to vector<128x8xbf16>
    %c8 = arith.constant 8 : index
    %c0_19 = arith.constant 0 : index
    %53 = vector.load %arg5[%c8, %c0_19] : memref<16x16xbf16, #tpu.memory_space<vmem>>, vector<8x16xbf16>
    %cst_20 = arith.constant dense<0.000000e+00> : vector<128x16xf32>
    %54 = tpu.matmul %52, %53, %cst_20 {dimension_numbers = #tpu.dot_dimension_numbers<[1], [0], [0], [1], [0, 0, 1, 1], [], []>} : vector<128x8xbf16>, vector<8x16xbf16>, vector<128x16xf32> -> vector<128x16xf32>
    %55 = arith.addf %49, %54 : vector<128x16xf32>
    %56 = vector.shape_cast %55 : vector<128x16xf32> to vector<2x8x8x16xf32>
    %57 = tpu.transpose %56, [1, 0, 2, 3] : vector<2x8x8x16xf32> -> vector<8x2x8x16xf32>
    %58 = vector.shape_cast %57 : vector<8x2x8x16xf32> to vector<1x8x16x16xf32>
    %c0_21 = arith.constant 0 : index
    %c0_22 = arith.constant 0 : index
    %c0_23 = arith.constant 0 : index
    %c0_24 = arith.constant 0 : index
    %59 = vector.load %arg8[%c0_21, %c0_22, %c0_23, %c0_24] : memref<1x8x16x16xf32, #tpu.memory_space<vmem>>, vector<1x8x16x16xf32>
    tpu.vector_store %arg8[%c0_21, %c0_22, %c0_23, %c0_24], %58 {strides = array<i32>} : memref<1x8x16x16xf32, #tpu.memory_space<vmem>>, vector<1x8x16x16xf32>,
    return
  }
  func.func @transform_0(%arg0: i32, %arg1: i32) -> (i32, i32, i32, i32) {
    %c0_i32 = arith.constant 0 : i32
    %c0_i32_0 = arith.constant 0 : i32
    %c0_i32_1 = arith.constant 0 : i32
    return %arg0, %arg1, %c0_i32, %c0_i32_0 : i32, i32, i32, i32
  }
  func.func @transform_1(%arg0: i32, %arg1: i32) -> (i32, i32) {
    %c0_i32 = arith.constant 0 : i32
    %c0_i32_0 = arith.constant 0 : i32
    %c0_i32_1 = arith.constant 0 : i32
    return %c0_i32, %c0_i32_0 : i32, i32
  }
  func.func @transform_2(%arg0: i32, %arg1: i32) -> (i32, i32) {
    %c0_i32 = arith.constant 0 : i32
    %c0_i32_0 = arith.constant 0 : i32
    %c0_i32_1 = arith.constant 0 : i32
    return %c0_i32, %c0_i32_0 : i32, i32
  }
  func.func @transform_3(%arg0: i32, %arg1: i32) -> (i32, i32) {
    %c0_i32 = arith.constant 0 : i32
    %c0_i32_0 = arith.constant 0 : i32
    %c0_i32_1 = arith.constant 0 : i32
    return %c0_i32, %c0_i32_0 : i32, i32
  }
  func.func @transform_4(%arg0: i32, %arg1: i32) -> (i32, i32) {
    %c0_i32 = arith.constant 0 : i32
    %c0_i32_0 = arith.constant 0 : i32
    %c0_i32_1 = arith.constant 0 : i32
    return %c0_i32, %c0_i32_0 : i32, i32
  }
  func.func @transform_5(%arg0: i32, %arg1: i32) -> (i32, i32, i32) {
    %c0_i32 = arith.constant 0 : i32
    %c0_i32_0 = arith.constant 0 : i32
    %c0_i32_1 = arith.constant 0 : i32
    %c0_i32_2 = arith.constant 0 : i32
    return %c0_i32, %c0_i32_0, %c0_i32_1 : i32, i32, i32
  }
  func.func @transform_6(%arg0: i32, %arg1: i32) -> (i32, i32, i32, i32) {
    %c0_i32 = arith.constant 0 : i32
    %c0_i32_0 = arith.constant 0 : i32
    %c0_i32_1 = arith.constant 0 : i32
    return %arg0, %arg1, %c0_i32, %c0_i32_0 : i32, i32, i32, i32
  }
}

</mosaic_0001>

<bundles_post_ra>
// kernel: window_attention_forward.1
= control target key start
LH: loop header
LB: loop body
LE: loop exit
PB: predicated region body
PF: predicated region fallthrough
CT: control target
= control target key end

     0   :  { %s2823_s21 = smov 0   ;;  %s2825_s22 = smov 0   ;;  %s3386_s0 = inlined_call_operand.vmem [shape: bf16[2,16,16,16], index: 0, kind: input, shape index: {}]   ;;  %s3387_s1 = inlined_call_operand.vmem [shape: bf16[16,48], index: 1, kind: input, shape index: {}]   ;;  %s3388_s2 = inlined_call_operand.vmem [shape: f32[1,48], index: 2, kind: input, shape index: {}]   ;;  %s3389_s3 = inlined_call_operand.vmem [shape: bf16[16,16], index: 3, kind: input, shape index: {}]   ;;  %s3390_s4 = inlined_call_operand.vmem [shape: f32[1,16], index: 4, kind: input, shape index: {}]   ;;  %s3391_s5 = inlined_call_operand.vmem [shape: bf16[2,64,64], index: 5, kind: input, shape index: {}]   ;;  %s3392_s6 = inlined_call_operand.vmem [shape: f32[2,16,16,16], index: 6, kind: output, shape index: {}]  }
   0x1   :  { %s2827_s23 = smov 0   ;;  %s2829_s24 = smov 0  }
   0x2   :  { %s2831_s25 = smov 0  }
   0x3 LB: > { %s25_s26 = sadd.s32 1, %s2775_s23  ;;  %s28_s27 = sadd.s32 1, %s2779_s24  ;;  %s2783_s25 = sphi %s2831_s25, %s16_s25   ;;  %s2779_s24 = sphi %s2829_s24, %s3396_s24   ;;  %s2775_s23 = sphi %s2827_s23, %s3395_s23   ;;  %s2771_s22 = sphi %s2825_s22, %s3394_s22   ;;  %s2767_s21 = sphi %s2823_s21, %s3393_s21  }
   0x4   : > { %p26_p0 = scmp.ge.s32.totalorder %s25_s26, 2  ;;  %p2125_p1 = scmp.ge.s32.totalorder %s2783_s25, 1 }
   0x5   : > { %p234_p2 = scmp.lt.s32.totalorder %s2783_s25, 5 }
   0x6   : > { %s3398_s26 = smov (%p26_p0, %s25_s26), 0  ;;  %s3400_s27 = smov (!%p26_p0, %s28_s27), %s2779_s24 }
   0x7   : > { %p235_p3 = pnand %p2125_p1, %p234_p2  ;;  %p30_p4 = scmp.ge.s32.totalorder %s3400_s27, 2 }
   0x8   : > { %v2608_v0 = vld [vmem:[%s3387_s1] sm:$0xff] (!%p235_p3)   ;;  %s2126_s30 = sshll.u32 (!%p235_p3), %s2767_s21, 3  ;;  %p275_p5 = scmp.lt.s32.totalorder (!%p235_p3), %s2771_s22, 1  ;;  %vm368_vm0 = vcmask (!%p235_p3), 130048   ;;  %vm530_vm1 = vcmask (!%p235_p3), 64512   ;;  %vm975_vm2 = vcmask (!%p235_p3), 523264  }
   0x9   : > { %s3402_s27 = smov (%p30_p4, %s3400_s27), 0  ;;  %238 = sbr.rel (%p235_p3) target bundleno = 1401 (0x579), region = 44 }
   0xa   : > { %p277_p6 = scmp.lt.s32.totalorder (!%p235_p3), %s2126_s30, 15  ;;  %2333 = vmatprep.subr.bf16.mxu0 (!%p235_p3), %v2608_v0  ;;  %v2134_v10 = vld [vmem:[%s3388_s2] ss:$0 sm:$0xff] (!%p235_p3)  ;;  %s2785_s16 = smov (!%p235_p3), 112   ;;  %vm1734_vm3 = vcmask (!%p235_p3), 1043456  }
   0xb   : > { %2334 = vmatpush3.bf16.msra.mxu0 (!%p235_p3), %v2608_v0  ;;  %s2786_s17 = smov (!%p235_p3), 120   ;;  %s2787_s18 = smov (!%p235_p3), 96  }
  0x10   : > { %s3404_s22 = smov (!%p275_p5, %s2771_s22), 1  ;;  %s3406_s30 = smov (!%p277_p6, %s2126_s30), 15 }
  0x11   : > { %s2128_s7 = sshll.u32 %s3404_s22, 5  ;;  %s2127_s8 = sshll.u32 %s3406_s30, 1 }
  0x12   : > { %s2856_s9 = sadd.s32 %s2128_s7, %s2127_s8 }
  0x13   : > { %s2129_s10 = sshll.u32 %s2856_s9, 2  ;;  %s2133_s21 = sshll.u32 %s2856_s9, 3 }
  0x14   : > { %s283_s13 = scalar_lea.vmem %s3386_s0, %s2129_s10  ;;  %s3337_s7 = scalar_lea.vmem %s3392_s6, %s2133_s21 }
  0x15   : > { %v2609_v1 = vld [vmem:[%s283_s13] ss:$8 sps:$4 sm:$0xff]   ;;  %v2610_v2 = vld [vmem:[%s283_s13 + $0x10] ss:$8 sps:$4 sm:$0xff]   ;;  %v2613_v5 = vld [vmem:[%s283_s13 + $0x4] ss:$8 sps:$4 sm:$0xff]  }
  0x16   : > { %2335 = vmatprep.mubr.msk.bf16.mxu0 %vm368_vm0, %v2609_v1  ;;  %v2611_v3 = vld [vmem:[%s283_s13 + $0x20] ss:$8 sps:$4 sm:$0xff]   ;;  %v2612_v4 = vld [vmem:[%s283_s13 + $0x30] ss:$8 sps:$4 sm:$0xff]   ;;  %v2614_v6 = vld [vmem:[%s283_s13 + $0x14] ss:$8 sps:$4 sm:$0xff]  }
  0x17   : > { %2336 = vmatmul.mubr.msk.bf16.vlgmr.msra.gmra.mrb[0].mxu0 %vm368_vm0, %v2610_v2  ;;  %v2615_v7 = vld [vmem:[%s283_s13 + $0x24] ss:$8 sps:$4 sm:$0xff]   ;;  %v2616_v8 = vld [vmem:[%s283_s13 + $0x34] ss:$8 sps:$4 sm:$0xff]  }
  0x18   : > { %2339 = vmatprep.mubr.msk.bf16.mxu0 %vm368_vm0, %v2611_v3 }
  0x1f   : > { %2340 = vmatmul.mubr.msk.bf16.gmra.mrb[4].mxu0 %vm368_vm0, %v2612_v4 }
  0x20   : > { %2343 = vmatprep.mubr.msk.bf16.mxu0 %vm368_vm0, %v2613_v5 }
  0x27   : > { %2344 = vmatmul.mubr.msk.bf16.gmra.mrb[8].mxu0 %vm368_vm0, %v2614_v6 }
  0x28   : > { %2347 = vmatprep.mubr.msk.bf16.mxu0 %vm368_vm0, %v2615_v7 }
  0x2f   : > { %2348 = vmatmul.mubr.msk.bf16.gmra.mrb[12].mxu0 %vm368_vm0, %v2616_v8 }
  0xea   : > { %v2337_v9 = vpop.f32.mrb[0].mxu0 }
  0xeb   : > { %v427_v11 = vpop.f32.mrb[1].mxu0  ;;  %v436_v13 = vadd.f32 %v2337_v9, %v2134_v10 }
  0xec   : > { %v2338_v12 = vpop.f32.mrb[2].mxu0  ;;  %v428_v16 = vadd.f32 %v2134_v10, %v427_v11 }
  0xed   : > { %v439_v14 = vadd.f32 %v2338_v12, %v2134_v10  ;;  %v430_v15 = vpop.f32.mrb[3].mxu0 }
  0xee   : > { %v431_v17 = vadd.f32 %v2134_v10, %v430_v15 }
  0xef   : > { %v2873_v18 = vpack.c.bf16 %v439_v14, %v436_v13 }
  0xf0   : > { %v2875_v19 = vpack.c.bf16 %v431_v17, %v428_v16 }
  0xf2   : > { %v2341_v20 = vpop.f32.mrb[4].mxu0  ;;  %522 = vrot.lane.b32.xlu1 %v2875_v19, %s2785_s16  ;;  %506 = vrot.lane.b32.xlu0 %v2875_v19, %s2786_s17 }
  0xf3   : > { %2359 = vmatprep.mubr.msk.bf16.mxu0 %vm530_vm1, %v2875_v19  ;;  %v443_v21 = vpop.f32.mrb[5].mxu0  ;;  %v452_v23 = vadd.f32 %v2341_v20, %v2134_v10 }
  0xf4   : > { %v2342_v22 = vpop.f32.mrb[6].mxu0  ;;  %v444_v26 = vadd.f32 %v2134_v10, %v443_v21 }
  0xf5   : > { %v455_v24 = vadd.f32 %v2342_v22, %v2134_v10  ;;  %v446_v25 = vpop.f32.mrb[7].mxu0 }
  0xf6   : > { %v447_v27 = vadd.f32 %v2134_v10, %v446_v25  ;;  %508 = vrot.lane.b32.xlu0 %v2873_v18, %s2786_s17 }
  0xf7   : > { %v2885_v28 = vpack.c.bf16 %v455_v24, %v452_v23 }
  0xf8   : > { %v2887_v29 = vpack.c.bf16 %v447_v27, %v444_v26 }
  0xfa   : > { %v2345_v30 = vpop.f32.mrb[8].mxu0  ;;  %510 = vrot.lane.b32.xlu1 %v2887_v29, %s2786_s17 }
  0xfb   : > { %v459_v31 = vpop.f32.mrb[9].mxu0  ;;  %v468_v33 = vadd.f32 %v2345_v30, %v2134_v10 }
  0xfc   : > { %v2346_v32 = vpop.f32.mrb[10].mxu0  ;;  %v460_v36 = vadd.f32 %v2134_v10, %v459_v31 }
  0xfd   : > { %v471_v34 = vadd.f32 %v2346_v32, %v2134_v10  ;;  %v462_v35 = vpop.f32.mrb[11].mxu0 }
  0xfe   : > { %v463_v37 = vadd.f32 %v2134_v10, %v462_v35  ;;  %524 = vrot.lane.b32.xlu1 %v2873_v18, %s2785_s16  ;;  %v2235_v35 = vld [vmem:[%s3391_s5 + $0x8] sm:$0xff]  }
  0xff   : > { %v2893_v38 = vpack.c.bf16 %v471_v34, %v468_v33 }
 0x100   : > { %v2895_v39 = vpack.c.bf16 %v463_v37, %v460_v36  ;;  %v2204_v36 = vld [vmem:[%s3391_s5] sm:$0xff]   ;;  %v2209_v37 = vunpack.c.l.bf16 %v2235_v35 }
 0x102   : > { %v2349_v40 = vpop.f32.mrb[12].mxu0  ;;  %516 = vrot.lane.b32.xlu1 %v2893_v38, %s2786_s17  ;;  %514 = vrot.lane.b32.xlu0 %v2895_v39, %s2786_s17 }
 0x103   : > { %v484_v41 = vadd.f32 %v2349_v40, %v2134_v10  ;;  %v475_v42 = vpop.f32.mrb[13].mxu0  ;;  %v2206_v40 = vunpack.c.h.bf16 %v2204_v36 }
 0x104   : > { %v476_v43 = vadd.f32 %v2134_v10, %v475_v42  ;;  %v2350_v44 = vpop.f32.mrb[14].mxu0 }
 0x105   : > { %v487_v45 = vadd.f32 %v2350_v44, %v2134_v10  ;;  %v478_v46 = vpop.f32.mrb[15].mxu0  ;;  %v2237_v44 = vld [vmem:[%s3391_s5 + $0x18] sm:$0xff]  }
 0x106   : > { %v479_v47 = vadd.f32 %v2134_v10, %v478_v46  ;;  %512 = vrot.lane.b32.xlu0 %v2885_v28, %s2786_s17  ;;  %v2210_v46 = vunpack.c.h.bf16 %v2235_v35 }
 0x107   : > { %v2903_v48 = vpack.c.bf16 %v487_v45, %v484_v41 }
 0x108   : > { %v2905_v49 = vpack.c.bf16 %v479_v47, %v476_v43 }
 0x10a   : > { %518 = vrot.lane.b32.xlu1 %v2905_v49, %s2786_s17  ;;  %526 = vrot.lane.b32.xlu0 %v2887_v29, %s2785_s16 }
 0x10e   : > { %520 = vrot.lane.b32.xlu1 %v2903_v48, %s2786_s17  ;;  %528 = vrot.lane.b32.xlu0 %v2885_v28, %s2785_s16 }
 0x112   : > { %622 = vrot.lane.b32.xlu1 %v2893_v38, %s2785_s16  ;;  %620 = vrot.lane.b32.xlu0 %v2895_v39, %s2785_s16 }
 0x116   : > { %624 = vrot.lane.b32.xlu0 %v2905_v49, %s2785_s16 }
 0x11a   : > { %626 = vrot.lane.b32.xlu0 %v2903_v48, %s2785_s16 }
 0x164   : > { %v523_v50 = vpop.permute.xlu1 %522  ;;  %v507_v51 = vpop.permute.xlu0 %506 }
 0x165   : > { %2547 = vmatprep.subr.msk.bf16.mxu0 %vm530_vm1, %v523_v50  ;;  %2391 = vmatprep.mubr.msk.bf16.mxu1 %vm530_vm1, %v507_v51  ;;  %v544_v52 = vsel %vm530_vm1, %v523_v50, 0  ;;  %v2236_v50 = vld [vmem:[%s3391_s5 + $0x10] sm:$0xff]  }
 0x166   : > { %717 = vrot.lane.b32.xlu1 %v507_v51, %s2785_s16  ;;  %2352 = vmatpush3.bf16.xpose.msra.mxu0 %v544_v52 }
 0x168   : > { %v2927_v53 = vpop.permute.xlu0 %508 }
 0x16a   : > { %719 = vrot.lane.b32.xlu1 %v2927_v53, %s2785_s16 }
 0x16c   : > { %v2931_v54 = vpop.permute.xlu1 %510 }
 0x16d   : > { %721 = vrot.lane.b32.xlu0 %v2931_v54, %s2785_s16 }
 0x170   : > { %v525_v55 = vpop.permute.xlu1 %524 }
 0x171   : > { %v547_v56 = vsel %vm530_vm1, %v525_v55, 0  ;;  %2548 = vmatprep.subr.msk.bf16.mxu0 %vm530_vm1, %v525_v55  ;;  %v2213_v55 = vunpack.c.l.bf16 %v2236_v50 }
 0x172   : > { %2354 = vmatpush3.bf16.xpose.msra.mxu0 %v547_v56  ;;  %v2218_v56 = vunpack.c.h.bf16 %v2237_v44 }
 0x174   : > { %v2937_v57 = vpop.permute.xlu0 %514  ;;  %v2941_v58 = vpop.permute.xlu1 %516 }
 0x175   : > { %814 = vrot.lane.b32.xlu1 %v2937_v57, %s2785_s16 }
 0x178   : > { %v2943_v59 = vpop.permute.xlu0 %512 }
 0x179   : > { %816 = vrot.lane.b32.xlu1 %v2941_v58, %s2785_s16  ;;  %723 = vrot.lane.b32.xlu0 %v2943_v59, %s2785_s16 }
 0x17c   : > { %v2949_v60 = vpop.permute.xlu1 %518  ;;  %v527_v61 = vpop.permute.xlu0 %526 }
 0x17d   : > { %v550_v62 = vsel %vm530_vm1, %v527_v61, 0  ;;  %818 = vrot.lane.b32.xlu0 %v2949_v60, %s2785_s16  ;;  %2549 = vmatprep.subr.msk.bf16.mxu0 %vm530_vm1, %v527_v61 }
 0x17e   : > { %2356 = vmatpush3.bf16.xpose.msra.mxu0 %v550_v62 }
 0x180   : > { %v2955_v63 = vpop.permute.xlu1 %520  ;;  %v529_v0 = vpop.permute.xlu0 %528 }
 0x181   : > { %820 = vrot.lane.b32.xlu1 %v2955_v63, %s2785_s16  ;;  %1282 = vrot.lane.b32.xlu0 %v2873_v18, %s2787_s18  ;;  %v553_v1 = vsel %vm530_vm1, %v529_v0, 0 }
 0x182   : > { %2550 = vmatprep.subr.msk.bf16.mxu0 %vm530_vm1, %v529_v0 }
 0x184   : > { %v621_v2 = vpop.permute.xlu0 %620  ;;  %v623_v4 = vpop.permute.xlu1 %622 }
 0x185   : > { %1280 = vrot.lane.b32.xlu1 %v2875_v19, %s2787_s18  ;;  %1369 = vrot.lane.b32.xlu0 %v2895_v39, %s2787_s18  ;;  %v641_v3 = vsel %vm530_vm1, %v621_v2, 0  ;;  %v644_v5 = vsel %vm530_vm1, %v623_v4, 0 }
 0x186   : > { %2358 = vmatpush3.bf16.xpose.msra.mxu0 %v553_v1  ;;  %v2214_v1 = vunpack.c.h.bf16 %v2236_v50 }
 0x187   : > { %2551 = vmatprep.subr.msk.bf16.mxu0 %vm530_vm1, %v621_v2 }
 0x188   : > { %v625_v6 = vpop.permute.xlu0 %624 }
 0x189   : > { %1284 = vrot.lane.b32.xlu1 %v2887_v29, %s2787_s18  ;;  %1373 = vrot.lane.b32.xlu0 %v2905_v49, %s2787_s18  ;;  %v647_v7 = vsel %vm530_vm1, %v625_v6, 0 }
 0x18c   : > { %v627_v8 = vpop.permute.xlu0 %626 }
 0x18d   : > { %1286 = vrot.lane.b32.xlu1 %v2885_v28, %s2787_s18  ;;  %1458 = vrot.lane.b32.xlu0 %v507_v51, %s2787_s18  ;;  %v650_v9 = vsel %vm530_vm1, %v627_v8, 0  ;;  %v2217_v51 = vunpack.c.l.bf16 %v2237_v44 }
 0x18e   : > { %2360 = vmatmul.mubr.msk.bf16.vlgmr.msra.gmra.mrb[16].mxu0 %vm530_vm1, %v2873_v18 }
 0x18f   : > { %2363 = vmatprep.mubr.msk.bf16.mxu0 %vm530_vm1, %v2887_v29  ;;  %2368 = vmatpush3.bf16.xpose.msra.mxu0 %v641_v3 }
 0x190   : > { %2552 = vmatprep.subr.msk.bf16.mxu0 %vm530_vm1, %v623_v4 }
 0x191   : > { %1371 = vrot.lane.b32.xlu1 %v2893_v38, %s2787_s18  ;;  %1462 = vrot.lane.b32.xlu0 %v2931_v54, %s2787_s18 }
 0x195   : > { %1375 = vrot.lane.b32.xlu1 %v2903_v48, %s2787_s18 }
 0x196   : > { %2364 = vmatmul.mubr.msk.bf16.gmra.mrb[20].mxu0 %vm530_vm1, %v2885_v28 }
 0x197   : > { %2370 = vmatpush3.bf16.xpose.msra.mxu0 %v644_v5  ;;  %2375 = vmatprep.mubr.msk.bf16.mxu0 %vm530_vm1, %v2895_v39 }
 0x198   : > { %2553 = vmatprep.subr.msk.bf16.mxu0 %vm530_vm1, %v625_v6 }
 0x199   : > { %1460 = vrot.lane.b32.xlu1 %v2927_v53, %s2787_s18 }
 0x19d   : > { %1464 = vrot.lane.b32.xlu1 %v2943_v59, %s2787_s18 }
 0x19f   : > { %2372 = vmatpush3.bf16.xpose.msra.mxu0 %v647_v7 }
 0x1a0   : > { %2554 = vmatprep.subr.msk.bf16.mxu0 %vm530_vm1, %v627_v8 }
 0x1a7   : > { %2374 = vmatpush3.bf16.xpose.msra.mxu0 %v650_v9 }
 0x1ae   : > { %2376 = vmatmul.mubr.msk.bf16.vlgmr.msra.gmra.mrb[24].mxu0 %vm530_vm1, %v2893_v38  ;;  %v2205_v38 = vunpack.c.l.bf16 %v2204_v36  ;;  %v2239_v36 = vld [vmem:[%s3391_s5 + $0x28] sm:$0xff]  }
 0x1af   : > { %2379 = vmatprep.mubr.msk.bf16.mxu0 %vm530_vm1, %v2905_v49 }
 0x1b6   : > { %2380 = vmatmul.mubr.msk.bf16.gmra.mrb[28].mxu0 %vm530_vm1, %v2903_v48 }
 0x1b7   : > { %2407 = vmatprep.mubr.msk.bf16.mxu0 %vm530_vm1, %v2937_v57 }
 0x1d8   : > { %v718_v10 = vpop.permute.xlu1 %717 }
 0x1d9   : > { %2555 = vmatprep.subr.msk.bf16.mxu1 %vm530_vm1, %v718_v10  ;;  %v738_v11 = vsel %vm530_vm1, %v718_v10, 0 }
 0x1da   : > { %2384 = vmatpush3.bf16.xpose.msra.mxu1 %v738_v11 }
 0x1dc   : > { %v720_v12 = vpop.permute.xlu1 %719 }
 0x1dd   : > { %2556 = vmatprep.subr.msk.bf16.mxu1 %vm530_vm1, %v720_v12  ;;  %v741_v13 = vsel %vm530_vm1, %v720_v12, 0 }
 0x1df   : > { %v722_v14 = vpop.permute.xlu0 %721 }
 0x1e0   : > { %v744_v17 = vsel %vm530_vm1, %v722_v14, 0 }
 0x1e2   : > { %2386 = vmatpush3.bf16.xpose.msra.mxu1 %v741_v13 }
 0x1e3   : > { %2557 = vmatprep.subr.msk.bf16.mxu1 %vm530_vm1, %v722_v14 }
 0x1e7   : > { %v815_v15 = vpop.permute.xlu1 %814 }
 0x1e8   : > { %v835_v16 = vsel %vm530_vm1, %v815_v15, 0  ;;  %2559 = vmatprep.subr.msk.bf16.mxu0 %vm530_vm1, %v815_v15 }
 0x1e9   : > { %2400 = vmatpush3.bf16.xpose.msra.mxu0 %v835_v16 }
 0x1ea   : > { %2388 = vmatpush3.bf16.xpose.msra.mxu1 %v744_v17 }
 0x1eb   : > { %v817_v18 = vpop.permute.xlu1 %816  ;;  %v724_v19 = vpop.permute.xlu0 %723 }
 0x1ec   : > { %2558 = vmatprep.subr.msk.bf16.mxu1 %vm530_vm1, %v724_v19  ;;  %2560 = vmatprep.subr.msk.bf16.mxu0 %vm530_vm1, %v817_v18  ;;  %v838_v21 = vsel %vm530_vm1, %v817_v18, 0  ;;  %v747_v22 = vsel %vm530_vm1, %v724_v19, 0 }
 0x1ef   : > { %v819_v20 = vpop.permute.xlu0 %818 }
 0x1f0   : > { %v841_v26 = vsel %vm530_vm1, %v819_v20, 0 }
 0x1f1   : > { %2402 = vmatpush3.bf16.xpose.msra.mxu0 %v838_v21 }
 0x1f2   : > { %2390 = vmatpush3.bf16.xpose.msra.mxu1 %v747_v22  ;;  %2561 = vmatprep.subr.msk.bf16.mxu0 %vm530_vm1, %v819_v20 }
 0x1f3   : > { %v821_v23 = vpop.permute.xlu1 %820  ;;  %v1283_v24 = vpop.permute.xlu0 %1282 }
 0x1f4   : > { %v844_v29 = vsel %vm530_vm1, %v821_v23, 0 }
 0x1f7   : > { %v1281_v25 = vpop.permute.xlu1 %1280  ;;  %v1370_v27 = vpop.permute.xlu0 %1369 }
 0x1f8   : > { %2415 = vmatprep.subr.bf16.mxu1 %v1281_v25 }
 0x1f9   : > { %2392 = vmatmul.mubr.msk.bf16.vlgmr.msra.gmra.mrb[0].mxu1 %vm530_vm1, %v2927_v53  ;;  %2404 = vmatpush3.bf16.xpose.msra.mxu0 %v841_v26 }
 0x1fa   : > { %2395 = vmatprep.mubr.msk.bf16.mxu1 %vm530_vm1, %v2931_v54  ;;  %2416 = vmatpush3.bf16.msra.mxu1 %v1281_v25 }
 0x1fb   : > { %2562 = vmatprep.subr.msk.bf16.mxu0 %vm530_vm1, %v821_v23  ;;  %2417 = vmatprep.subr.bf16.mxu1 %v1283_v24  ;;  %v1285_v28 = vpop.permute.xlu1 %1284  ;;  %v1374_v30 = vpop.permute.xlu0 %1373 }
 0x1fe   : > { %2418 = vmatpush3.bf16.msra.mxu1 %v1283_v24 }
 0x1ff   : > { %2419 = vmatprep.subr.bf16.mxu1 %v1285_v28  ;;  %v1287_v31 = vpop.permute.xlu1 %1286  ;;  %v3030_v32 = vpop.permute.xlu0 %1458 }
 0x201   : > { %2396 = vmatmul.mubr.msk.bf16.gmra.mrb[4].mxu1 %vm530_vm1, %v2943_v59  ;;  %2406 = vmatpush3.bf16.xpose.msra.mxu0 %v844_v29 }
 0x202   : > { %2420 = vmatpush3.bf16.msra.mxu1 %v1285_v28  ;;  %2431 = vmatprep.subr.bf16.mxu0 %v1370_v27 }
 0x203   : > { %2421 = vmatprep.subr.bf16.mxu1 %v1287_v31  ;;  %v1372_v33 = vpop.permute.xlu1 %1371 }
 0x206   : > { %2422 = vmatpush3.bf16.msra.mxu1 %v1287_v31 }
 0x207   : > { %2447 = vmatprep.subr.bf16.mxu1 %v3030_v32  ;;  %v1376_v34 = vpop.permute.xlu1 %1375 }
 0x208   : > { %2408 = vmatmul.mubr.msk.bf16.vlgmr.msra.gmra.mrb[32].mxu0 %vm530_vm1, %v2941_v58 }
 0x209   : > { %2411 = vmatprep.mubr.msk.bf16.mxu0 %vm530_vm1, %v2949_v60  ;;  %2432 = vmatpush3.bf16.msra.mxu0 %v1370_v27 }
 0x20a   : > { %2433 = vmatprep.subr.bf16.mxu0 %v1372_v33 }
 0x20d   : > { %2434 = vmatpush3.bf16.msra.mxu0 %v1372_v33 }
 0x20e   : > { %2435 = vmatprep.subr.bf16.mxu0 %v1374_v30 }
 0x210   : > { %2412 = vmatmul.mubr.msk.bf16.gmra.mrb[36].mxu0 %vm530_vm1, %v2955_v63 }
 0x211   : > { %2436 = vmatpush3.bf16.msra.mxu0 %v1374_v30 }
 0x212   : > { %2437 = vmatprep.subr.bf16.mxu0 %v1376_v34 }
 0x215   : > { %2438 = vmatpush3.bf16.msra.mxu0 %v1376_v34 }
 0x261   : > { %v2361_v39 = vpop.f32.mrb[16].mxu0 }
 0x262   : > { %v3045_v41 = vadd.f32 %v2361_v39, %v2209_v37  ;;  %v589_v42 = vpop.f32.mrb[17].mxu0 }
 0x263   : > { %v2362_v43 = vpop.f32.mrb[18].mxu0  ;;  %v3050_v45 = vadd.f32 %v2205_v38, %v589_v42 }
 0x264   : > { %v592_v47 = vpop.f32.mrb[19].mxu0  ;;  %v982_v48 = vsel %vm975_vm2, %v3045_v41, -inf  ;;  %v3061_v53 = vadd.f32 %v2362_v43, %v2210_v46 }
 0x265   : > { %v3054_v49 = vadd.f32 %v2206_v40, %v592_v47  ;;  %983 = vmax.xlane.f32.xlu0 %v982_v48  ;;  %v976_v54 = vsel %vm975_vm2, %v3050_v45, -inf  ;;  %v2241_v48 = vld [vmem:[%s3391_s5 + $0x38] sm:$0xff]  }
 0x266   : > { %v985_v5 = vsel %vm975_vm2, %v3061_v53, -inf }
 0x267   : > { %v979_v52 = vsel %vm975_vm2, %v3054_v49, -inf }
 0x268   : > { %980 = vmax.xlane.f32.xlu1 %v979_v52 }
 0x269   : > { %977 = vmax.xlane.f32.xlu0 %v976_v54  ;;  %v2365_v59 = vpop.f32.mrb[20].mxu0 }
 0x26a   : > { %v3065_v61 = vadd.f32 %v2365_v59, %v2217_v51  ;;  %v605_v62 = vpop.f32.mrb[21].mxu0 }
 0x26b   : > { %v2366_v0 = vpop.f32.mrb[22].mxu0  ;;  %v3067_v2 = vadd.f32 %v2213_v55, %v605_v62  ;;  %v2233_v62 = vunpack.c.l.bf16 %v2241_v48 }
 0x26c   : > { %v3069_v3 = vadd.f32 %v2366_v0, %v2218_v56  ;;  %v608_v4 = vpop.f32.mrb[23].mxu0  ;;  %v994_v6 = vsel %vm975_vm2, %v3065_v61, -inf }
 0x26d   : > { %986 = vmax.xlane.f32.xlu0 %v985_v5  ;;  %995 = vmax.xlane.f32.xlu1 %v994_v6  ;;  %v3075_v7 = vadd.f32 %v2214_v1, %v608_v4  ;;  %v988_v8 = vsel %vm975_vm2, %v3067_v2, -inf  ;;  %v2234_v4 = vunpack.c.h.bf16 %v2241_v48 }
 0x26e   : > { %v997_v9 = vsel %vm975_vm2, %v3069_v3, -inf }
 0x26f   : > { %v991_v10 = vsel %vm975_vm2, %v3075_v7, -inf }
 0x271   : > { %989 = vmax.xlane.f32.xlu1 %v988_v8  ;;  %998 = vmax.xlane.f32.xlu0 %v997_v9 }
 0x275   : > { %992 = vmax.xlane.f32.xlu0 %v991_v10 }
 0x281   : > { %v2377_v11 = vpop.f32.mrb[24].mxu0 }
 0x282   : > { %v3083_v12 = vadd.f32 %v2377_v11, %v2209_v37  ;;  %v686_v13 = vpop.f32.mrb[25].mxu0  ;;  %v2238_v37 = vld [vmem:[%s3391_s5 + $0x20] sm:$0xff]  }
 0x283   : > { %v3085_v14 = vadd.f32 %v2205_v38, %v686_v13  ;;  %v2378_v15 = vpop.f32.mrb[26].mxu0  ;;  %v2225_v38 = vunpack.c.l.bf16 %v2239_v36  ;;  %v2221_v39 = vunpack.c.l.bf16 %v2238_v37 }
 0x284   : > { %v3087_v16 = vadd.f32 %v2378_v15, %v2210_v46  ;;  %v689_v17 = vpop.f32.mrb[27].mxu0  ;;  %v1006_v18 = vsel %vm975_vm2, %v3083_v12, -inf  ;;  %v2222_v46 = vunpack.c.h.bf16 %v2238_v37 }
 0x285   : > { %1007 = vmax.xlane.f32.xlu0 %v1006_v18  ;;  %v1000_v19 = vsel %vm975_vm2, %v3085_v14, -inf  ;;  %v3093_v20 = vadd.f32 %v2206_v40, %v689_v17  ;;  %v2226_v40 = vunpack.c.h.bf16 %v2239_v36 }
 0x286   : > { %1001 = vmax.xlane.f32.xlu1 %v1000_v19  ;;  %v1009_v21 = vsel %vm975_vm2, %v3087_v16, -inf }
 0x287   : > { %v1003_v28 = vsel %vm975_vm2, %v3093_v20, -inf }
 0x289   : > { %1010 = vmax.xlane.f32.xlu0 %v1009_v21  ;;  %v2381_v22 = vpop.f32.mrb[28].mxu0 }
 0x28a   : > { %v702_v23 = vpop.f32.mrb[29].mxu0  ;;  %v3099_v26 = vadd.f32 %v2381_v22, %v2217_v51 }
 0x28b   : > { %v3097_v24 = vadd.f32 %v2213_v55, %v702_v23  ;;  %v2382_v25 = vpop.f32.mrb[30].mxu0  ;;  %v2240_v55 = vld [vmem:[%s3391_s5 + $0x30] sm:$0xff]  }
 0x28c   : > { %v705_v27 = vpop.f32.mrb[31].mxu0  ;;  %v3105_v30 = vadd.f32 %v2382_v25, %v2218_v56  ;;  %v1018_v31 = vsel %vm975_vm2, %v3099_v26, -inf  ;;  %v2230_v10 = vunpack.c.h.bf16 %v2240_v55 }
 0x28d   : > { %1004 = vmax.xlane.f32.xlu0 %v1003_v28  ;;  %v1012_v29 = vsel %vm975_vm2, %v3097_v24, -inf  ;;  %v3109_v33 = vadd.f32 %v2214_v1, %v705_v27  ;;  %v2229_v1 = vunpack.c.l.bf16 %v2240_v55 }
 0x28e   : > { %1013 = vmax.xlane.f32.xlu1 %v1012_v29  ;;  %v1021_v34 = vsel %vm975_vm2, %v3105_v30, -inf }
 0x28f   : > { %v1015_v35 = vsel %vm975_vm2, %v3109_v33, -inf }
 0x291   : > { %1019 = vmax.xlane.f32.xlu0 %v1018_v31 }
 0x295   : > { %1022 = vmax.xlane.f32.xlu0 %v1021_v34 }
 0x299   : > { %1016 = vmax.xlane.f32.xlu0 %v1015_v35 }
 0x2cc   : > { %v2393_v42 = vpop.f32.mrb[0].mxu1 }
 0x2cd   : > { %v3121_v43 = vadd.f32 %v2393_v42, %v2225_v38  ;;  %v783_v44 = vpop.f32.mrb[1].mxu1 }
 0x2ce   : > { %v2394_v47 = vpop.f32.mrb[2].mxu1  ;;  %v3126_v50 = vadd.f32 %v2221_v39, %v783_v44 }
 0x2cf   : > { %v3128_v51 = vadd.f32 %v2394_v47, %v2226_v40  ;;  %v786_v52 = vpop.f32.mrb[3].mxu1  ;;  %v1030_v54 = vsel %vm975_vm2, %v3121_v43, -inf }
 0x2d0   : > { %1031 = vmax.xlane.f32.xlu0 %v1030_v54  ;;  %v3135_v56 = vadd.f32 %v2222_v46, %v786_v52  ;;  %v1024_v0 = vsel %vm975_vm2, %v3126_v50, -inf }
 0x2d1   : > { %v1033_v59 = vsel %vm975_vm2, %v3128_v51, -inf }
 0x2d2   : > { %1034 = vmax.xlane.f32.xlu1 %v1033_v59  ;;  %v1027_v9 = vsel %vm975_vm2, %v3135_v56, -inf }
 0x2d4   : > { %v2397_v5 = vpop.f32.mrb[4].mxu1  ;;  %1025 = vmax.xlane.f32.xlu0 %v1024_v0  ;;  %v1461_v0 = vpop.permute.xlu1 %1460 }
 0x2d5   : > { %v3141_v6 = vadd.f32 %v2397_v5, %v2233_v62  ;;  %v799_v8 = vpop.f32.mrb[5].mxu1  ;;  %v1463_v5 = vpop.permute.xlu0 %1462 }
 0x2d6   : > { %v2398_v11 = vpop.f32.mrb[6].mxu1  ;;  %1028 = vmax.xlane.f32.xlu1 %v1027_v9  ;;  %v3145_v13 = vadd.f32 %v2229_v1, %v799_v8 }
 0x2d7   : > { %v3147_v15 = vadd.f32 %v2398_v11, %v2234_v4  ;;  %v802_v17 = vpop.f32.mrb[7].mxu1  ;;  %v1042_v18 = vsel %vm975_vm2, %v3141_v6, -inf }
 0x2d8   : > { %1043 = vmax.xlane.f32.xlu0 %v1042_v18  ;;  %v3151_v19 = vadd.f32 %v2230_v10, %v802_v17  ;;  %v1036_v22 = vsel %vm975_vm2, %v3145_v13, -inf  ;;  %v3187_v8 = vpop.permute.xlu1 %1464 }
 0x2d9   : > { %v1045_v21 = vsel %vm975_vm2, %v3147_v15, -inf }
 0x2da   : > { %1046 = vmax.xlane.f32.xlu1 %v1045_v21  ;;  %v1039_v28 = vsel %vm975_vm2, %v3151_v19, -inf }
 0x2db   : > { %v2409_v23 = vpop.f32.mrb[32].mxu0 }
 0x2dc   : > { %1037 = vmax.xlane.f32.xlu0 %v1036_v22  ;;  %v3157_v25 = vadd.f32 %v2409_v23, %v2225_v38  ;;  %v880_v27 = vpop.f32.mrb[33].mxu0 }
 0x2dd   : > { %v2410_v29 = vpop.f32.mrb[34].mxu0  ;;  %v3165_v36 = vadd.f32 %v2221_v39, %v880_v27 }
 0x2de   : > { %1040 = vmax.xlane.f32.xlu1 %v1039_v28  ;;  %v3161_v31 = vadd.f32 %v2410_v29, %v2226_v40  ;;  %v883_v34 = vpop.f32.mrb[35].mxu0  ;;  %v1054_v35 = vsel %vm975_vm2, %v3157_v25, -inf }
 0x2df   : > { %v3169_v38 = vadd.f32 %v2222_v46, %v883_v34  ;;  %v1048_v42 = vsel %vm975_vm2, %v3165_v36, -inf }
 0x2e0   : > { %1055 = vmax.xlane.f32.xlu0 %v1054_v35  ;;  %v1057_v37 = vsel %vm975_vm2, %v3161_v31, -inf }
 0x2e1   : > { %v1051_v48 = vsel %vm975_vm2, %v3169_v38, -inf }
 0x2e2   : > { %1058 = vmax.xlane.f32.xlu1 %v1057_v37 }
 0x2e3   : > { %v2413_v44 = vpop.f32.mrb[36].mxu0 }
 0x2e4   : > { %1049 = vmax.xlane.f32.xlu0 %v1048_v42  ;;  %v3173_v40 = vadd.f32 %v2413_v44, %v2233_v62  ;;  %v896_v47 = vpop.f32.mrb[37].mxu0 }
 0x2e5   : > { %v2414_v39 = vpop.f32.mrb[38].mxu0  ;;  %v3181_v55 = vadd.f32 %v2229_v1, %v896_v47 }
 0x2e6   : > { %1052 = vmax.xlane.f32.xlu1 %v1051_v48  ;;  %v3177_v52 = vadd.f32 %v2414_v39, %v2234_v4  ;;  %v899_v54 = vpop.f32.mrb[39].mxu0  ;;  %v1066_v46 = vsel %vm975_vm2, %v3173_v40, -inf }
 0x2e7   : > { %v3183_v59 = vadd.f32 %v2230_v10, %v899_v54  ;;  %v1060_v62 = vsel %vm975_vm2, %v3181_v55, -inf }
 0x2e8   : > { %1067 = vmax.xlane.f32.xlu0 %v1066_v46 }
 0x2ec   : > { %1061 = vmax.xlane.f32.xlu0 %v1060_v62 }
 0x2f2   : > { %v984_v9 = vpop.xlane.xlu0 %983 }
 0x2f3   : > { %v1074_v11 = vsub.f32 %v3045_v41, %v984_v9 }
 0x2f5   : > { %v981_v4 = vpop.xlane.xlu1 %980  ;;  %v1108_v22 = vmul.f32 1.442695, %v1074_v11 }
 0x2f6   : > { %v1073_v17 = vsub.f32 %v3054_v49, %v981_v4  ;;  %v978_v18 = vpop.xlane.xlu0 %977 }
 0x2f7   : > { %v1072_v1 = vsub.f32 %v3050_v45, %v978_v18  ;;  %1549 = vrot.lane.b32.xlu1 %v2941_v58, %s2787_s18 }
 0x2f8   : > { %v1106_v10 = vmul.f32 1.442695, %v1073_v17 }
 0x2f9   : > { %v1104_v21 = vmul.f32 1.442695, %v1072_v1 }
 0x2fa   : > { %2617 = vpow2.f32 %v1106_v10  ;;  %v987_v23 = vpop.xlane.xlu0 %986  ;;  %v996_v27 = vpop.xlane.xlu1 %995 }
 0x2fb   : > { %2619 = vpow2.f32 %v1104_v21  ;;  %v1075_v28 = vsub.f32 %v3061_v53, %v987_v23  ;;  %1551 = vrot.lane.b32.xlu1 %v2949_v60, %s2787_s18  ;;  %v1078_v34 = vsub.f32 %v3065_v61, %v996_v27 }
 0x2fc   : > { %2621 = vpow2.f32 %v1108_v22 }
 0x2fd   : > { %v1110_v41 = vmul.f32 1.442695, %v1075_v28  ;;  %v1116_v47 = vmul.f32 1.442695, %v1078_v34  ;;  %v1069_v28 = vsel %vm975_vm2, %v3177_v52, -inf }
 0x2fe   : > { %v990_v49 = vpop.xlane.xlu1 %989  ;;  %v999_v29 = vpop.xlane.xlu0 %998 }
 0x2ff   : > { %2623 = vpow2.f32 %v1110_v41  ;;  %v1076_v45 = vsub.f32 %v3067_v2, %v990_v49  ;;  %v1079_v58 = vsub.f32 %v3069_v3, %v999_v29 }
 0x301   : > { %v1112_v35 = vmul.f32 1.442695, %v1076_v45  ;;  %v1118_v37 = vmul.f32 1.442695, %v1079_v58 }
 0x302   : > { %v993_v42 = vpop.xlane.xlu0 %992  ;;  %1547 = vrot.lane.b32.xlu0 %v2937_v57, %s2787_s18 }
 0x303   : > { %v1077_v53 = vsub.f32 %v3075_v7, %v993_v42  ;;  %2625 = vpow2.f32 %v1112_v35 }
 0x304   : > { %v2618_v60 = vpop.eup %2617  ;;  %2627 = vpow2.f32 %v1118_v37 }
 0x305   : > { %v3203_v44 = vpop.eup %2619  ;;  %v1114_v48 = vmul.f32 1.442695, %v1077_v53 }
 0x306   : > { %v1264_v2 = vpack.c.bf16 %v2618_v60, %v3203_v44  ;;  %v3206_v3 = vpop.eup %2621 }
 0x307   : > { %2629 = vpow2.f32 %v1114_v48 }
 0x308   : > { %2423 = vmatprep.mubr.msk.bf16.mxu1 %vm975_vm2, %v1264_v2  ;;  %2631 = vpow2.f32 %v1116_v47 }
 0x309   : > { %v2624_v61 = vpop.eup %2623 }
 0x30a   : > { %v1265_v57 = vpack.c.bf16 %v2624_v61, %v3206_v3  ;;  %v1177_v29 = vsel %vm975_vm2, %v2624_v61, 0.0 }
 0x30c   : > { %2424 = vmatmul.mubr.msk.bf16.vlgmr.msra.gmra.mrb[8].mxu1 %vm975_vm2, %v1265_v57 }
 0x30d   : > { %2448 = vmatpush3.bf16.msra.mxu1 %v3030_v32  ;;  %v3212_v7 = vpop.eup %2625 }
 0x30e   : > { %2449 = vmatprep.subr.bf16.mxu1 %v1461_v0  ;;  %v2628_v39 = vpop.eup %2627 }
 0x30f   : > { %v1189_v2 = vsel %vm975_vm2, %v2628_v39, 0.0 }
 0x311   : > { %v2630_v54 = vpop.eup %2629  ;;  %2450 = vmatpush3.bf16.msra.mxu1 %v1461_v0 }
 0x312   : > { %2451 = vmatprep.subr.bf16.mxu1 %v1463_v5  ;;  %v1008_v46 = vpop.xlane.xlu0 %1007  ;;  %v1266_v62 = vpack.c.bf16 %v2630_v54, %v3212_v7  ;;  %v3215_v9 = vpop.eup %2631  ;;  %v1183_v53 = vsel %vm975_vm2, %v2630_v54, 0.0 }
 0x313   : > { %v1002_v4 = vpop.xlane.xlu1 %1001  ;;  %v1267_v11 = vpack.c.bf16 %v2628_v39, %v3215_v9  ;;  %v1082_v18 = vsub.f32 %v3083_v12, %v1008_v46  ;;  %v1171_v12 = vsel %vm975_vm2, %v2618_v60, 0.0 }
 0x314   : > { %2427 = vmatprep.mubr.msk.bf16.mxu1 %vm975_vm2, %v1266_v62  ;;  %v1080_v17 = vsub.f32 %v3085_v14, %v1002_v4 }
 0x315   : > { %2452 = vmatpush3.bf16.msra.mxu1 %v1463_v5  ;;  %v1124_v23 = vmul.f32 1.442695, %v1082_v18 }
 0x316   : > { %2428 = vmatmul.mubr.msk.bf16.gmra.mrb[12].mxu1 %vm975_vm2, %v1267_v11  ;;  %2453 = vmatprep.subr.bf16.mxu1 %v3187_v8  ;;  %v1011_v32 = vpop.xlane.xlu0 %1010  ;;  %v1120_v1 = vmul.f32 1.442695, %v1080_v17 }
 0x317   : > { %v1083_v0 = vsub.f32 %v3087_v16, %v1011_v32  ;;  %v1174_v32 = vsel %vm975_vm2, %v3206_v3, 0.0 }
 0x318   : > { %2633 = vpow2.f32 %v1120_v1  ;;  %v1180_v1 = vsel %vm975_vm2, %v3212_v7, 0.0 }
 0x319   : > { %2454 = vmatpush3.bf16.msra.mxu1 %v3187_v8  ;;  %v1126_v10 = vmul.f32 1.442695, %v1083_v0 }
 0x31a   : > { %v1005_v21 = vpop.xlane.xlu0 %1004 }
 0x31b   : > { %v1081_v22 = vsub.f32 %v3093_v20, %v1005_v21  ;;  %2635 = vpow2.f32 %v1126_v10  ;;  %v1014_v5 = vpop.xlane.xlu1 %1013  ;;  %v1063_v20 = vsel %vm975_vm2, %v3183_v59, -inf }
 0x31c   : > { %v1084_v16 = vsub.f32 %v3097_v24, %v1014_v5  ;;  %v1186_v5 = vsel %vm975_vm2, %v3215_v9, 0.0 }
 0x31d   : > { %v1122_v14 = vmul.f32 1.442695, %v1081_v22 }
 0x31e   : > { %v1020_v27 = vpop.xlane.xlu0 %1019  ;;  %v1128_v45 = vmul.f32 1.442695, %v1084_v16 }
 0x31f   : > { %2637 = vpow2.f32 %v1122_v14  ;;  %1070 = vmax.xlane.f32.xlu1 %v1069_v28  ;;  %v1086_v49 = vsub.f32 %v3099_v26, %v1020_v27 }
 0x320   : > { %2639 = vpow2.f32 %v1124_v23 }
 0x321   : > { %1172 = vadd.xlane.f32.xlu0 %v1171_v12  ;;  %v1132_v42 = vmul.f32 1.442695, %v1086_v49  ;;  %2641 = vpow2.f32 %v1128_v45 }
 0x322   : > { %v1023_v8 = vpop.xlane.xlu0 %1022  ;;  %v2634_v35 = vpop.eup %2633 }
 0x323   : > { %v1087_v41 = vsub.f32 %v3105_v30, %v1023_v8  ;;  %1064 = vmax.xlane.f32.xlu1 %v1063_v20 }
 0x325   : > { %1178 = vadd.xlane.f32.xlu0 %v1177_v29  ;;  %v1134_v58 = vmul.f32 1.442695, %v1087_v41  ;;  %v2636_v24 = vpop.eup %2635 }
 0x326   : > { %v1017_v34 = vpop.xlane.xlu0 %1016  ;;  %v1201_v54 = vsel %vm975_vm2, %v2636_v24, 0.0 }
 0x327   : > { %v1085_v37 = vsub.f32 %v3109_v33, %v1017_v34  ;;  %2643 = vpow2.f32 %v1134_v58 }
 0x329   : > { %v2638_v60 = vpop.eup %2637  ;;  %v1130_v47 = vmul.f32 1.442695, %v1085_v37  ;;  %1184 = vadd.xlane.f32.xlu0 %v1183_v53 }
 0x32a   : > { %v2640_v30 = vpop.eup %2639  ;;  %v1268_v26 = vpack.c.bf16 %v2638_v60, %v2634_v35  ;;  %v1195_v33 = vsel %vm975_vm2, %v2638_v60, 0.0 }
 0x32b   : > { %v1269_v48 = vpack.c.bf16 %v2636_v24, %v2640_v30  ;;  %2645 = vpow2.f32 %v1130_v47  ;;  %v2642_v61 = vpop.eup %2641  ;;  %v1198_v41 = vsel %vm975_vm2, %v2640_v30, 0.0 }
 0x32c   : > { %2647 = vpow2.f32 %v1132_v42  ;;  %2439 = vmatprep.mubr.msk.bf16.mxu0 %vm975_vm2, %v1268_v26 }
 0x32d   : > { %2440 = vmatmul.mubr.msk.bf16.vlgmr.msra.gmra.mrb[40].mxu0 %vm975_vm2, %v1269_v48  ;;  %1190 = vadd.xlane.f32.xlu0 %v1189_v2 }
 0x331   : > { %1196 = vadd.xlane.f32.xlu0 %v1195_v33  ;;  %v2644_v57 = vpop.eup %2643 }
 0x332   : > { %v1213_v17 = vsel %vm975_vm2, %v2644_v57, 0.0 }
 0x334   : > { %1553 = vrot.lane.b32.xlu1 %v2955_v63, %s2787_s18  ;;  %v1168_v63 = vsel %vm975_vm2, %v3203_v44, 0.0 }
 0x335   : > { %v2646_v46 = vpop.eup %2645  ;;  %1202 = vadd.xlane.f32.xlu0 %v1201_v54 }
 0x336   : > { %v3244_v62 = vpop.eup %2647  ;;  %v1270_v4 = vpack.c.bf16 %v2646_v46, %v2642_v61  ;;  %v1207_v11 = vsel %vm975_vm2, %v2646_v46, 0.0 }
 0x337   : > { %v1271_v39 = vpack.c.bf16 %v2644_v57, %v3244_v62  ;;  %v1210_v30 = vsel %vm975_vm2, %v3244_v62, 0.0 }
 0x338   : > { %2443 = vmatprep.mubr.msk.bf16.mxu0 %vm975_vm2, %v1270_v4 }
 0x339   : > { %2444 = vmatmul.mubr.msk.bf16.gmra.mrb[44].mxu0 %vm975_vm2, %v1271_v39  ;;  %1208 = vadd.xlane.f32.xlu0 %v1207_v11 }
 0x33d   : > { %1214 = vadd.xlane.f32.xlu0 %v1213_v17 }
 0x358   : > { %1169 = vadd.xlane.f32.xlu1 %v1168_v63 }
 0x35c   : > { %1175 = vadd.xlane.f32.xlu1 %v1174_v32 }
 0x35d   : > { %v1032_v0 = vpop.xlane.xlu0 %1031 }
 0x35e   : > { %v1090_v21 = vsub.f32 %v3121_v43, %v1032_v0  ;;  %v1192_v43 = vsel %vm975_vm2, %v2634_v35, 0.0  ;;  %v1204_v35 = vsel %vm975_vm2, %v2642_v61, 0.0 }
 0x35f   : > { %v1035_v18 = vpop.xlane.xlu1 %1034 }
 0x360   : > { %v1091_v10 = vsub.f32 %v3128_v51, %v1035_v18  ;;  %1181 = vadd.xlane.f32.xlu1 %v1180_v1  ;;  %v1140_v28 = vmul.f32 1.442695, %v1090_v21 }
 0x361   : > { %v1026_v22 = vpop.xlane.xlu0 %1025 }
 0x362   : > { %v1142_v23 = vmul.f32 1.442695, %v1091_v10  ;;  %v1088_v14 = vsub.f32 %v3126_v50, %v1026_v22 }
 0x363   : > { %v1029_v44 = vpop.xlane.xlu1 %1028 }
 0x364   : > { %v1136_v3 = vmul.f32 1.442695, %v1088_v14  ;;  %v1089_v27 = vsub.f32 %v3135_v56, %v1029_v44  ;;  %1187 = vadd.xlane.f32.xlu1 %v1186_v5  ;;  %2649 = vpow2.f32 %v1142_v23 }
 0x365   : > { %v1044_v12 = vpop.xlane.xlu0 %1043 }
 0x366   : > { %v1138_v7 = vmul.f32 1.442695, %v1089_v27  ;;  %2651 = vpow2.f32 %v1136_v3  ;;  %v1094_v50 = vsub.f32 %v3141_v6, %v1044_v12 }
 0x367   : > { %v1047_v51 = vpop.xlane.xlu1 %1046 }
 0x368   : > { %2653 = vpow2.f32 %v1138_v7  ;;  %v1095_v16 = vsub.f32 %v3147_v15, %v1047_v51  ;;  %1193 = vadd.xlane.f32.xlu1 %v1192_v43  ;;  %v1148_v45 = vmul.f32 1.442695, %v1094_v50 }
 0x369   : > { %2655 = vpow2.f32 %v1140_v28  ;;  %v1038_v9 = vpop.xlane.xlu0 %1037 }
 0x36a   : > { %v1150_v8 = vmul.f32 1.442695, %v1095_v16  ;;  %v1092_v56 = vsub.f32 %v3145_v13, %v1038_v9 }
 0x36b   : > { %v1041_v20 = vpop.xlane.xlu1 %1040 }
 0x36c   : > { %v1144_v49 = vmul.f32 1.442695, %v1092_v56  ;;  %v1093_v29 = vsub.f32 %v3151_v19, %v1041_v20  ;;  %1199 = vadd.xlane.f32.xlu1 %v1198_v41  ;;  %2657 = vpow2.f32 %v1150_v8 }
 0x36d   : > { %v1056_v58 = vpop.xlane.xlu0 %1055 }
 0x36e   : > { %v1146_v34 = vmul.f32 1.442695, %v1093_v29  ;;  %2659 = vpow2.f32 %v1144_v49  ;;  %v2650_v6 = vpop.eup %2649 }
 0x36f   : > { %v1059_v15 = vpop.xlane.xlu1 %1058  ;;  %v1225_v46 = vsel %vm975_vm2, %v2650_v6, 0.0 }
 0x370   : > { %2661 = vpow2.f32 %v1146_v34  ;;  %1205 = vadd.xlane.f32.xlu1 %v1204_v35  ;;  %v2652_v37 = vpop.eup %2651  ;;  %v1099_v42 = vsub.f32 %v3161_v31, %v1059_v15  ;;  %v1709_v31 = vld [vmem:[%s3389_s3] sm:$0xf] }
 0x371   : > { %2663 = vpow2.f32 %v1148_v45  ;;  %v1050_v13 = vpop.xlane.xlu0 %1049  ;;  %2563 = vmatprep.subr.msk.bf16.mxu1 %vm1734_vm3, %v1709_v31  ;;  %v1736_v54 = vsel %vm1734_vm3, %v1709_v31, 0  ;;  %v1216_v62 = vsel %vm975_vm2, %v2652_v37, 0.0 }
 0x372   : > { %v2654_v24 = vpop.eup %2653  ;;  %v1096_v19 = vsub.f32 %v3165_v36, %v1050_v13  ;;  %v1158_v36 = vmul.f32 1.442695, %v1099_v42 }
 0x373   : > { %v2656_v53 = vpop.eup %2655  ;;  %v1053_v60 = vpop.xlane.xlu1 %1052  ;;  %v1219_v47 = vsel %vm975_vm2, %v2654_v24, 0.0  ;;  %v1272_v26 = vpack.c.bf16 %v2654_v24, %v2652_v37 }
 0x374   : > { %v1273_v48 = vpack.c.bf16 %v2650_v6, %v2656_v53  ;;  %v1152_v2 = vmul.f32 1.442695, %v1096_v19  ;;  %v1097_v33 = vsub.f32 %v3169_v38, %v1053_v60  ;;  %1220 = vadd.xlane.f32.xlu0 %v1219_v47  ;;  %1211 = vadd.xlane.f32.xlu1 %v1210_v30  ;;  %v1098_v38 = vsub.f32 %v3157_v25, %v1056_v58  ;;  %v1865_v19 = vld [vmem:[%s3389_s3 + $0x4] sm:$0xf] }
 0x375   : > { %2455 = vmatprep.mubr.msk.bf16.mxu1 %vm975_vm2, %v1272_v26  ;;  %v1068_v61 = vpop.xlane.xlu0 %1067  ;;  %v1222_v63 = vsel %vm975_vm2, %v2656_v53, 0.0 }
 0x376   : > { %v1154_v57 = vmul.f32 1.442695, %v1097_v33  ;;  %2456 = vmatmul.mubr.msk.bf16.vlgmr.msra.gmra.mrb[16].mxu1 %vm975_vm2, %v1273_v48  ;;  %2665 = vpow2.f32 %v1152_v2  ;;  %v2658_v4 = vpop.eup %2657  ;;  %v1156_v0 = vmul.f32 1.442695, %v1098_v38  ;;  %v1102_v23 = vsub.f32 %v3173_v40, %v1068_v61 }
 0x377   : > { %2480 = vmatpush3.bf16.msra.mxu1 %v1736_v54  ;;  %v1550_v21 = vpop.permute.xlu1 %1549 }
 0x378   : > { %2667 = vpow2.f32 %v1154_v57  ;;  %1226 = vadd.xlane.f32.xlu0 %v1225_v46  ;;  %1217 = vadd.xlane.f32.xlu1 %v1216_v62  ;;  %v2660_v39 = vpop.eup %2659  ;;  %v1164_v27 = vmul.f32 1.442695, %v1102_v23 }
 0x379   : > { %v1062_v11 = vpop.xlane.xlu0 %1061  ;;  %2669 = vpow2.f32 %v1158_v36  ;;  %v1228_v44 = vsel %vm975_vm2, %v2660_v39, 0.0  ;;  %2564 = vmatprep.subr.msk.bf16.mxu1 %vm1734_vm3, %v1865_v19 }
 0x37a   : > { %v2662_v17 = vpop.eup %2661  ;;  %v1100_v25 = vsub.f32 %v3181_v55, %v1062_v11  ;;  %2671 = vpow2.f32 %v1156_v0  ;;  %v1237_v55 = vsel %vm975_vm2, %v2658_v4, 0.0 }
 0x37b   : > { %v2664_v32 = vpop.eup %2663  ;;  %v1231_v18 = vsel %vm975_vm2, %v2662_v17, 0.0  ;;  %v1274_v1 = vpack.c.bf16 %v2662_v17, %v2660_v39  ;;  %v1552_v28 = vpop.permute.xlu1 %1551 }
 0x37c   : > { %1232 = vadd.xlane.f32.xlu0 %v1231_v18  ;;  %1223 = vadd.xlane.f32.xlu1 %v1222_v63  ;;  %v1275_v10 = vpack.c.bf16 %v2658_v4, %v2664_v32  ;;  %v1160_v14 = vmul.f32 1.442695, %v1100_v25  ;;  %v1234_v40 = vsel %vm975_vm2, %v2664_v32, 0.0 }
 0x37d   : > { %2459 = vmatprep.mubr.msk.bf16.mxu1 %vm975_vm2, %v1274_v1  ;;  %v1548_v22 = vpop.permute.xlu0 %1547 }
 0x37e   : > { %2460 = vmatmul.mubr.msk.bf16.gmra.mrb[20].mxu1 %vm975_vm2, %v1275_v10  ;;  %2463 = vmatprep.subr.bf16.mxu0 %v1548_v22  ;;  %2673 = vpow2.f32 %v1160_v14  ;;  %v1891_v14 = vsel %vm1734_vm3, %v1865_v19, 0 }
 0x37f   : > { %2464 = vmatpush3.bf16.msra.mxu0 %v1548_v22  ;;  %2675 = vpow2.f32 %v1164_v27 }
 0x380   : > { %1238 = vadd.xlane.f32.xlu0 %v1237_v55  ;;  %2465 = vmatprep.subr.bf16.mxu0 %v1550_v21  ;;  %v2666_v5 = vpop.eup %2665 }
 0x381   : > { %1229 = vadd.xlane.f32.xlu1 %v1228_v44  ;;  %v1240_v16 = vsel %vm975_vm2, %v2666_v5, 0.0 }
 0x382   : > { %v2668_v3 = vpop.eup %2667 }
 0x383   : > { %2466 = vmatpush3.bf16.msra.mxu0 %v1550_v21  ;;  %v1243_v12 = vsel %vm975_vm2, %v2668_v3, 0.0  ;;  %v1276_v7 = vpack.c.bf16 %v2668_v3, %v2666_v5  ;;  %v2670_v51 = vpop.eup %2669 }
 0x384   : > { %1244 = vadd.xlane.f32.xlu0 %v1243_v12  ;;  %2467 = vmatprep.subr.bf16.mxu0 %v1552_v28  ;;  %v1249_v43 = vsel %vm975_vm2, %v2670_v51, 0.0  ;;  %v2672_v50 = vpop.eup %2671 }
 0x385   : > { %1235 = vadd.xlane.f32.xlu1 %v1234_v40  ;;  %2471 = vmatprep.mubr.msk.bf16.mxu0 %vm975_vm2, %v1276_v7  ;;  %v1246_v9 = vsel %vm975_vm2, %v2672_v50, 0.0  ;;  %v1277_v6 = vpack.c.bf16 %v2670_v51, %v2672_v50 }
 0x387   : > { %2468 = vmatpush3.bf16.msra.mxu0 %v1552_v28 }
 0x388   : > { %1250 = vadd.xlane.f32.xlu0 %v1249_v43  ;;  %v2674_v8 = vpop.eup %2673 }
 0x389   : > { %1241 = vadd.xlane.f32.xlu1 %v1240_v16  ;;  %v1252_v56 = vsel %vm975_vm2, %v2674_v8, 0.0  ;;  %v2676_v20 = vpop.eup %2675 }
 0x38a   : > { %v1258_v41 = vsel %vm975_vm2, %v2676_v20, 0.0 }
 0x38d   : > { %1247 = vadd.xlane.f32.xlu1 %v1246_v9 }
 0x391   : > { %1253 = vadd.xlane.f32.xlu1 %v1252_v56 }
 0x395   : > { %1259 = vadd.xlane.f32.xlu1 %v1258_v41 }
 0x3ac   : > { %v1071_v49 = vpop.xlane.xlu1 %1070 }
 0x3ad   : > { %v1103_v29 = vsub.f32 %v3177_v52, %v1071_v49 }
 0x3ae   : > { %v1173_v53 = vpop.xlane.xlu0 %1172 }
 0x3af   : > { %v1166_v45 = vmul.f32 1.442695, %v1103_v29 }
 0x3b0   : > { %v1065_v58 = vpop.xlane.xlu1 %1064 }
 0x3b1   : > { %v1101_v34 = vsub.f32 %v3183_v59, %v1065_v58  ;;  %2677 = vpow2.f32 %v1166_v45 }
 0x3b2   : > { %v1179_v60 = vpop.xlane.xlu0 %1178 }
 0x3b3   : > { %v1162_v15 = vmul.f32 1.442695, %v1101_v34 }
 0x3b4   : > { %v1554_v35 = vpop.permute.xlu1 %1553 }
 0x3b5   : > { %2679 = vpow2.f32 %v1162_v15  ;;  %2469 = vmatprep.subr.bf16.mxu0 %v1554_v35 }
 0x3b6   : > { %2470 = vmatpush3.bf16.msra.mxu0 %v1554_v35  ;;  %v1185_v48 = vpop.xlane.xlu0 %1184  ;;  %2681 = vrcp.f32 %v1173_v53 }
 0x3b9   : > { %2472 = vmatmul.mubr.msk.bf16.vlgmr.msra.gmra.mrb[48].mxu0 %vm975_vm2, %v1277_v6 }
 0x3ba   : > { %v1191_v61 = vpop.xlane.xlu0 %1190 }
 0x3bb   : > { %v2678_v37 = vpop.eup %2677 }
 0x3bc   : > { %v1279_v52 = vpack.c.bf16 %v2678_v37, %v2676_v20  ;;  %v1261_v59 = vsel %vm975_vm2, %v2678_v37, 0.0 }
 0x3be   : > { %v1197_v4 = vpop.xlane.xlu0 %1196 }
 0x3bf   : > { %v2680_v13 = vpop.eup %2679 }
 0x3c0   : > { %v1255_v24 = vsel %vm975_vm2, %v2680_v13, 0.0  ;;  %v1278_v42 = vpack.c.bf16 %v2680_v13, %v2674_v8  ;;  %v2682_v62 = vpop.eup %2681 }
 0x3c1   : > { %1256 = vadd.xlane.f32.xlu0 %v1255_v24 }
 0x3c2   : > { %2475 = vmatprep.mubr.msk.bf16.mxu0 %vm975_vm2, %v1278_v42  ;;  %v1203_v18 = vpop.xlane.xlu0 %1202 }
 0x3c3   : > { %2476 = vmatmul.mubr.msk.bf16.gmra.mrb[52].mxu0 %vm975_vm2, %v1279_v52 }
 0x3c5   : > { %1262 = vadd.xlane.f32.xlu0 %v1261_v59 }
 0x3c6   : > { %v1209_v28 = vpop.xlane.xlu0 %1208 }
 0x3ca   : > { %v1215_v8 = vpop.xlane.xlu0 %1214 }
 0x3df   : > { %v2425_v47 = vpop.f32.mrb[8].mxu1 }
 0x3e0   : > { %v1338_v30 = vpop.f32.mrb[9].mxu1 }
 0x3e1   : > { %v2426_v26 = vpop.f32.mrb[10].mxu1 }
 0x3e2   : > { %v1341_v2 = vpop.f32.mrb[11].mxu1 }
 0x3e3   : > { %v1669_v11 = vmul.f32 %v2682_v62, %v1341_v2 }
 0x3e5   : > { %v1170_v33 = vpop.xlane.xlu1 %1169 }
 0x3e6   : > { %2683 = vrcp.f32 %v1170_v33 }
 0x3e7   : > { %2685 = vrcp.f32 %v1179_v60 }
 0x3e9   : > { %v2429_v31 = vpop.f32.mrb[12].mxu1  ;;  %v1176_v36 = vpop.xlane.xlu1 %1175 }
 0x3ea   : > { %v1354_v57 = vpop.f32.mrb[13].mxu1  ;;  %2687 = vrcp.f32 %v1176_v36 }
 0x3eb   : > { %v2430_v54 = vpop.f32.mrb[14].mxu1  ;;  %2689 = vrcp.f32 %v1185_v48 }
 0x3ec   : > { %v1357_v38 = vpop.f32.mrb[15].mxu1 }
 0x3ed   : > { %v1182_v46 = vpop.xlane.xlu1 %1181 }
 0x3ee   : > { %2691 = vrcp.f32 %v1182_v46 }
 0x3ef   : > { %2693 = vrcp.f32 %v1191_v61 }
 0x3f0   : > { %v2684_v39 = vpop.eup %2683 }
 0x3f1   : > { %v1188_v17 = vpop.xlane.xlu1 %1187  ;;  %v1668_v63 = vmul.f32 %v2684_v39, %v1338_v30  ;;  %v2686_v32 = vpop.eup %2685 }
 0x3f2   : > { %2695 = vrcp.f32 %v1188_v17  ;;  %v1671_v1 = vmul.f32 %v2686_v32, %v2426_v26 }
 0x3f3   : > { %v1701_v0 = vpack.c.bf16 %v1669_v11, %v1668_v63 }
 0x3f4   : > { %v2688_v25 = vpop.eup %2687 }
 0x3f5   : > { %v1670_v10 = vmul.f32 %v2688_v25, %v2425_v47  ;;  %2481 = vmatprep.mubr.msk.bf16.mxu1 %vm530_vm1, %v1701_v0  ;;  %v1194_v21 = vpop.xlane.xlu1 %1193  ;;  %v2690_v22 = vpop.eup %2689 }
 0x3f6   : > { %2697 = vrcp.f32 %v1194_v21  ;;  %v1673_v44 = vmul.f32 %v2690_v22, %v1357_v38 }
 0x3f7   : > { %v1702_v23 = vpack.c.bf16 %v1671_v1, %v1670_v10  ;;  %2699 = vrcp.f32 %v1197_v4 }
 0x3f8   : > { %v2692_v55 = vpop.eup %2691  ;;  %2701 = vrcp.f32 %v1203_v18 }
 0x3f9   : > { %2482 = vmatmul.mubr.msk.bf16.vlgmr.msra.gmra.mrb[24].mxu1 %vm530_vm1, %v1702_v23  ;;  %v1200_v5 = vpop.xlane.xlu1 %1199  ;;  %v1672_v3 = vmul.f32 %v2692_v55, %v1354_v57  ;;  %v2694_v27 = vpop.eup %2693 }
 0x3fa   : > { %2703 = vrcp.f32 %v1200_v5  ;;  %2498 = vmatpush3.bf16.msra.mxu1 %v1891_v14  ;;  %v1675_v51 = vmul.f32 %v2694_v27, %v2430_v54 }
 0x3fb   : > { %v1703_v12 = vpack.c.bf16 %v1673_v44, %v1672_v3  ;;  %2705 = vrcp.f32 %v1209_v28 }
 0x3fc   : > { %v2696_v7 = vpop.eup %2695 }
 0x3fd   : > { %2485 = vmatprep.mubr.msk.bf16.mxu1 %vm530_vm1, %v1703_v12  ;;  %v1206_v40 = vpop.xlane.xlu1 %1205  ;;  %v1674_v43 = vmul.f32 %v2696_v7, %v2429_v31 }
 0x3ff   : > { %v1704_v16 = vpack.c.bf16 %v1675_v51, %v1674_v43 }
 0x400   : > { %v2441_v50 = vpop.f32.mrb[40].mxu0  ;;  %v2698_v9 = vpop.eup %2697 }
 0x401   : > { %v1427_v56 = vpop.f32.mrb[41].mxu0  ;;  %2486 = vmatmul.mubr.msk.bf16.gmra.mrb[28].mxu1 %vm530_vm1, %v1704_v16  ;;  %v2700_v20 = vpop.eup %2699 }
 0x402   : > { %v1212_v41 = vpop.xlane.xlu1 %1211  ;;  %v2442_v49 = vpop.f32.mrb[42].mxu0  ;;  %v1676_v34 = vmul.f32 %v2698_v9, %v1427_v56 }
 0x403   : > { %v2702_v29 = vpop.eup %2701  ;;  %2707 = vrcp.f32 %v1212_v41  ;;  %v1430_v45 = vpop.f32.mrb[43].mxu0 }
 0x404   : > { %v2704_v58 = vpop.eup %2703  ;;  %2709 = vrcp.f32 %v1215_v8  ;;  %v1677_v15 = vmul.f32 %v2700_v20, %v1430_v45  ;;  %v1679_v6 = vmul.f32 %v2702_v29, %v2442_v49  ;;  %v1221_v31 = vpop.xlane.xlu0 %1220 }
 0x405   : > { %2711 = vrcp.f32 %v1206_v40  ;;  %v1678_v35 = vmul.f32 %v2704_v58, %v2441_v50  ;;  %v2706_v24 = vpop.eup %2705 }
 0x406   : > { %v1705_v37 = vpack.c.bf16 %v1677_v15, %v1676_v34  ;;  %v1218_v36 = vpop.xlane.xlu1 %1217  ;;  %2713 = vrcp.f32 %v1221_v31 }
 0x407   : > { %v1706_v13 = vpack.c.bf16 %v1679_v6, %v1678_v35 }
 0x408   : > { %2489 = vmatprep.mubr.msk.bf16.mxu1 %vm530_vm1, %v1705_v37  ;;  %v1227_v57 = vpop.xlane.xlu0 %1226 }
 0x409   : > { %2490 = vmatmul.mubr.msk.bf16.gmra.mrb[32].mxu1 %vm530_vm1, %v1706_v13  ;;  %2715 = vrcp.f32 %v1227_v57 }
 0x40a   : > { %v1224_v54 = vpop.xlane.xlu1 %1223 }
 0x40b   : > { %2717 = vrcp.f32 %v1224_v54 }
 0x40c   : > { %v2445_v42 = vpop.f32.mrb[44].mxu0  ;;  %v1233_v38 = vpop.xlane.xlu0 %1232  ;;  %2719 = vrcp.f32 %v1218_v36 }
 0x40d   : > { %v2708_v52 = vpop.eup %2707  ;;  %v1443_v59 = vpop.f32.mrb[45].mxu0  ;;  %2721 = vrcp.f32 %v1233_v38 }
 0x40e   : > { %v2710_v19 = vpop.eup %2709  ;;  %v2446_v53 = vpop.f32.mrb[46].mxu0  ;;  %v1682_v47 = vmul.f32 %v2708_v52, %v2445_v42 }
 0x40f   : > { %v2712_v60 = vpop.eup %2711  ;;  %v1683_v30 = vmul.f32 %v2710_v19, %v2446_v53  ;;  %v1446_v26 = vpop.f32.mrb[47].mxu0 }
 0x410   : > { %v1680_v48 = vmul.f32 %v2712_v60, %v1443_v59  ;;  %v1681_v2 = vmul.f32 %v2706_v24, %v1446_v26  ;;  %v1230_v46 = vpop.xlane.xlu1 %1229  ;;  %v1239_v62 = vpop.xlane.xlu0 %1238 }
 0x411   : > { %v1708_v33 = vpack.c.bf16 %v1683_v30, %v1682_v47  ;;  %2723 = vrcp.f32 %v1239_v62  ;;  %v2714_v39 = vpop.eup %2713 }
 0x412   : > { %v1707_v61 = vpack.c.bf16 %v1681_v2, %v1680_v48 }
 0x413   : > { %v2716_v17 = vpop.eup %2715 }
 0x414   : > { %2493 = vmatprep.mubr.msk.bf16.mxu1 %vm530_vm1, %v1707_v61  ;;  %v1236_v4 = vpop.xlane.xlu1 %1235  ;;  %v1245_v56 = vpop.xlane.xlu0 %1244 }
 0x415   : > { %2494 = vmatmul.mubr.msk.bf16.gmra.mrb[36].mxu1 %vm530_vm1, %v1708_v33  ;;  %2725 = vrcp.f32 %v1236_v4  ;;  %v2718_v32 = vpop.eup %2717 }
 0x416   : > { %2727 = vrcp.f32 %v1230_v46  ;;  %v2720_v25 = vpop.eup %2719 }
 0x417   : > { %v2722_v55 = vpop.eup %2721  ;;  %2729 = vrcp.f32 %v1245_v56 }
 0x418   : > { %v1242_v8 = vpop.xlane.xlu1 %1241  ;;  %v1251_v41 = vpop.xlane.xlu0 %1250 }
 0x419   : > { %2731 = vrcp.f32 %v1251_v41 }
 0x41b   : > { %v2724_v5 = vpop.eup %2723 }
 0x41c   : > { %v1248_v20 = vpop.xlane.xlu1 %1247 }
 0x41d   : > { %2733 = vrcp.f32 %v1248_v20 }
 0x41e   : > { %2735 = vrcp.f32 %v1242_v8 }
 0x41f   : > { %v2726_v27 = vpop.eup %2725 }
 0x420   : > { %v2728_v12 = vpop.eup %2727  ;;  %v1254_v49 = vpop.xlane.xlu1 %1253 }
 0x421   : > { %v2730_v34 = vpop.eup %2729  ;;  %2737 = vrcp.f32 %v1254_v49 }
 0x423   : > { %v2732_v35 = vpop.eup %2731 }
 0x424   : > { %v1260_v45 = vpop.xlane.xlu1 %1259 }
 0x425   : > { %2739 = vrcp.f32 %v1260_v45 }
 0x427   : > { %v2734_v37 = vpop.eup %2733 }
 0x428   : > { %v2736_v24 = vpop.eup %2735 }
 0x42b   : > { %v2738_v30 = vpop.eup %2737 }
 0x42f   : > { %v2740_v48 = vpop.eup %2739 }
 0x449   : > { %v2457_v11 = vpop.f32.mrb[16].mxu1 }
 0x44a   : > { %v1516_v63 = vpop.f32.mrb[17].mxu1  ;;  %v1686_v18 = vmul.f32 %v2718_v32, %v2457_v11 }
 0x44b   : > { %v2458_v0 = vpop.f32.mrb[18].mxu1  ;;  %v1684_v21 = vmul.f32 %v2720_v25, %v1516_v63 }
 0x44c   : > { %v1687_v1 = vmul.f32 %v2716_v17, %v2458_v0  ;;  %v1519_v10 = vpop.f32.mrb[19].mxu1 }
 0x44d   : > { %v1685_v22 = vmul.f32 %v2714_v39, %v1519_v10  ;;  %v2192_v39 = vld [vmem:[%s3390_s4] ss:$0 sm:$0xff] }
 0x44e   : > { %v1858_v23 = vpack.c.bf16 %v1687_v1, %v1686_v18  ;;  %v1257_v29 = vpop.xlane.xlu0 %1256 }
 0x44f   : > { %v1857_v14 = vpack.c.bf16 %v1685_v22, %v1684_v21 }
 0x451   : > { %v2461_v44 = vpop.f32.mrb[20].mxu1  ;;  %2499 = vmatprep.mubr.msk.bf16.mxu1 %vm530_vm1, %v1857_v14 }
 0x452   : > { %v1532_v3 = vpop.f32.mrb[21].mxu1  ;;  %2500 = vmatmul.mubr.msk.bf16.vlgmr.msra.gmra.mrb[24].mxu1 %vm530_vm1, %v1858_v23  ;;  %v1690_v7 = vmul.f32 %v2726_v27, %v2461_v44  ;;  %v1263_v58 = vpop.xlane.xlu0 %1262 }
 0x453   : > { %v2462_v28 = vpop.f32.mrb[22].mxu1  ;;  %v1688_v43 = vmul.f32 %v2728_v12, %v1532_v3  ;;  %2741 = vrcp.f32 %v1263_v58 }
 0x454   : > { %v1691_v51 = vmul.f32 %v2724_v5, %v2462_v28  ;;  %v1535_v40 = vpop.f32.mrb[23].mxu1  ;;  %2743 = vrcp.f32 %v1257_v29 }
 0x455   : > { %v1689_v16 = vmul.f32 %v2722_v55, %v1535_v40 }
 0x456   : > { %v1860_v50 = vpack.c.bf16 %v1691_v51, %v1690_v7 }
 0x457   : > { %v1859_v9 = vpack.c.bf16 %v1689_v16, %v1688_v43 }
 0x459   : > { %2503 = vmatprep.mubr.msk.bf16.mxu1 %vm530_vm1, %v1859_v9 }
 0x45a   : > { %2504 = vmatmul.mubr.msk.bf16.gmra.mrb[28].mxu1 %vm530_vm1, %v1860_v50 }
 0x45d   : > { %v2742_v33 = vpop.eup %2741 }
 0x45e   : > { %v2744_v31 = vpop.eup %2743 }
 0x48c   : > { %v2473_v15 = vpop.f32.mrb[48].mxu0 }
 0x48d   : > { %v1605_v6 = vpop.f32.mrb[49].mxu0  ;;  %v1694_v42 = vmul.f32 %v2734_v37, %v2473_v15 }
 0x48e   : > { %v2474_v13 = vpop.f32.mrb[50].mxu0  ;;  %v1692_v19 = vmul.f32 %v2736_v24, %v1605_v6 }
 0x48f   : > { %v1695_v52 = vmul.f32 %v2732_v35, %v2474_v13  ;;  %v1608_v59 = vpop.f32.mrb[51].mxu0 }
 0x490   : > { %v1693_v53 = vmul.f32 %v2730_v34, %v1608_v59 }
 0x491   : > { %v1862_v60 = vpack.c.bf16 %v1695_v52, %v1694_v42 }
 0x492   : > { %v1861_v47 = vpack.c.bf16 %v1693_v53, %v1692_v19 }
 0x494   : > { %2507 = vmatprep.mubr.msk.bf16.mxu1 %vm530_vm1, %v1861_v47 }
 0x495   : > { %2508 = vmatmul.mubr.msk.bf16.gmra.mrb[32].mxu1 %vm530_vm1, %v1862_v60 }
 0x496   : > { %v2477_v26 = vpop.f32.mrb[52].mxu0 }
 0x497   : > { %v1621_v2 = vpop.f32.mrb[53].mxu0  ;;  %v1698_v36 = vmul.f32 %v2740_v48, %v2477_v26 }
 0x498   : > { %v2478_v61 = vpop.f32.mrb[54].mxu0  ;;  %v1696_v38 = vmul.f32 %v2738_v30, %v1621_v2 }
 0x499   : > { %v1699_v57 = vmul.f32 %v2742_v33, %v2478_v61  ;;  %v1624_v54 = vpop.f32.mrb[55].mxu0 }
 0x49a   : > { %v1697_v46 = vmul.f32 %v2744_v31, %v1624_v54 }
 0x49b   : > { %v1864_v62 = vpack.c.bf16 %v1699_v57, %v1698_v36 }
 0x49c   : > { %v1863_v4 = vpack.c.bf16 %v1697_v46, %v1696_v38 }
 0x49e   : > { %2511 = vmatprep.mubr.msk.bf16.mxu1 %vm530_vm1, %v1863_v4 }
 0x49f   : > { %2512 = vmatmul.mubr.msk.bf16.gmra.mrb[36].mxu1 %vm530_vm1, %v1864_v62 }
 0x525   : > { %v2501_v11 = vpop.f32.mrb[24].mxu1 }
 0x526   : > { %v2515_v17 = vadd.f32 %v2501_v11, %v2192_v39  ;;  %v1927_v63 = vpop.f32.mrb[25].mxu1 }
 0x527   : > { %v2516_v32 = vadd.f32 %v2192_v39, %v1927_v63  ;;  %v2502_v0 = vpop.f32.mrb[26].mxu1 }
 0x528   : > { %2010 = vst.msk [vmem:[%s3337_s7 + $0x20] sm:$0xff] %vm368_vm0, %v2515_v17  ;;  %v2517_v25 = vadd.f32 %v2502_v0, %v2192_v39  ;;  %v1930_v18 = vpop.f32.mrb[27].mxu1 }
 0x529   : > { %2006 = vst.msk [vmem:[%s3337_s7] sm:$0xff] %vm368_vm0, %v2516_v32  ;;  %v2518_v1 = vadd.f32 %v2192_v39, %v1930_v18 }
 0x52a   : > { %2012 = vst.msk [vmem:[%s3337_s7 + $0x30] sm:$0xff] %vm368_vm0, %v2517_v25 }
 0x52b   : > { %2008 = vst.msk [vmem:[%s3337_s7 + $0x10] sm:$0xff] %vm368_vm0, %v2518_v1 }
 0x52d   : > { %v2505_v10 = vpop.f32.mrb[28].mxu1 }
 0x52e   : > { %v2519_v21 = vadd.f32 %v2505_v10, %v2192_v39  ;;  %v1943_v22 = vpop.f32.mrb[29].mxu1 }
 0x52f   : > { %v2520_v23 = vadd.f32 %v2192_v39, %v1943_v22  ;;  %v2506_v14 = vpop.f32.mrb[30].mxu1 }
 0x530   : > { %2018 = vst.msk [vmem:[%s3337_s7 + $0x60] sm:$0xff] %vm368_vm0, %v2519_v21  ;;  %v2521_v55 = vadd.f32 %v2506_v14, %v2192_v39  ;;  %v1946_v44 = vpop.f32.mrb[31].mxu1 }
 0x531   : > { %2014 = vst.msk [vmem:[%s3337_s7 + $0x40] sm:$0xff] %vm368_vm0, %v2520_v23  ;;  %v2522_v5 = vadd.f32 %v2192_v39, %v1946_v44 }
 0x532   : > { %2020 = vst.msk [vmem:[%s3337_s7 + $0x70] sm:$0xff] %vm368_vm0, %v2521_v55 }
 0x533   : > { %2016 = vst.msk [vmem:[%s3337_s7 + $0x50] sm:$0xff] %vm368_vm0, %v2522_v5 }
 0x568   : > { %v2509_v3 = vpop.f32.mrb[32].mxu1 }
 0x569   : > { %v2523_v27 = vadd.f32 %v2509_v3, %v2192_v39  ;;  %v1959_v28 = vpop.f32.mrb[33].mxu1 }
 0x56a   : > { %v2524_v12 = vadd.f32 %v2192_v39, %v1959_v28  ;;  %v2510_v7 = vpop.f32.mrb[34].mxu1 }
 0x56b   : > { %2011 = vst.msk [vmem:[%s3337_s7 + $0x28] sm:$0xff] %vm368_vm0, %v2523_v27  ;;  %v2525_v51 = vadd.f32 %v2510_v7, %v2192_v39  ;;  %v1962_v40 = vpop.f32.mrb[35].mxu1 }
 0x56c   : > { %2007 = vst.msk [vmem:[%s3337_s7 + $0x8] sm:$0xff] %vm368_vm0, %v2524_v12  ;;  %v2526_v43 = vadd.f32 %v2192_v39, %v1962_v40 }
 0x56d   : > { %2013 = vst.msk [vmem:[%s3337_s7 + $0x38] sm:$0xff] %vm368_vm0, %v2525_v51 }
 0x56e   : > { %2009 = vst.msk [vmem:[%s3337_s7 + $0x18] sm:$0xff] %vm368_vm0, %v2526_v43 }
 0x572   : > { %v2513_v16 = vpop.f32.mrb[36].mxu1 }
 0x573   : > { %v2527_v50 = vadd.f32 %v2513_v16, %v2192_v39  ;;  %v1975_v9 = vpop.f32.mrb[37].mxu1 }
 0x574   : > { %v2528_v8 = vadd.f32 %v2192_v39, %v1975_v9  ;;  %v2514_v56 = vpop.f32.mrb[38].mxu1 }
 0x575   : > { %2019 = vst.msk [vmem:[%s3337_s7 + $0x68] sm:$0xff] %vm368_vm0, %v2527_v50  ;;  %v2529_v20 = vadd.f32 %v2514_v56, %v2192_v39  ;;  %v1978_v41 = vpop.f32.mrb[39].mxu1 }
 0x576   : > { %2015 = vst.msk [vmem:[%s3337_s7 + $0x48] sm:$0xff] %vm368_vm0, %v2528_v8  ;;  %v2530_v49 = vadd.f32 %v2192_v39, %v1978_v41 }
 0x577   : > { %2021 = vst.msk [vmem:[%s3337_s7 + $0x78] sm:$0xff] %vm368_vm0, %v2529_v20 }
 0x578   : > { %2017 = vst.msk [vmem:[%s3337_s7 + $0x58] sm:$0xff] %vm368_vm0, %v2530_v49 }
 0x579 PF: > { %s16_s25 = sadd.s32 1, %s2783_s25   ;;  %s3393_s21 = smov %s2775_s23 }
 0x57a   : > { %p13_p7 = scmp.ge.s32.totalorder %s16_s25, 6   ;;  %s3394_s22 = smov %s2779_s24 }
 0x57b   : > { %s3395_s23 = smov %s3398_s26  ;;  %s3396_s24 = smov %s3402_s27 }
 0x57c   :  { %15 = sbr.rel (!%p13_p7) target bundleno = 3 (0x3), region = 74 }

</bundles_post_ra>
